<compile_context>
chip_gen: v7x
topology: tpu7x:2x2x1
jax: 0.10.0
libtpu: 0.0.40
codegen_flags: <defaults>
</compile_context>

<pallas_src>
import jax
import jax.numpy as jnp
from jax.experimental import pallas as pl
from jax.experimental.pallas import tpu as pltpu

# ---------------------------------------------------------------------------
# Small, module-consistent sizes (synthetic). The real module uses
# IMAGE_SIZE=(256,256), CHANNELS=3, hidden=512, classes=len(get_label_names()).
# ---------------------------------------------------------------------------
CHANNELS = 3
IMAGE_SIZE = (16, 16)            # small stand-in for (256, 256)
HIDDEN = 512
# TODO(synk): len(get_label_names()) scans a data directory at runtime; use a
# fixed deterministic class count instead.
NUM_CLASSES = 8

IN_FEATURES = IMAGE_SIZE[0] * IMAGE_SIZE[1] * CHANNELS  # 768


def _round_up(x, m):
    return (x + m - 1) // m * m


def _mlp_kernel(x_ref, w1_ref, b1_ref, w2_ref, b2_ref, w3_ref, b3_ref,
                out_ref, acc_ref):
    """grid = (batch_tile i, K_tile k).  Accumulate layer-1 over k, then run
    layers 2/3 + lane-dense output store in the k==last epilogue."""
    k = pl.program_id(1)

    @pl.when(k == 0)
    def _():
        acc_ref[...] = jnp.zeros_like(acc_ref)

    # Layer 1 partial product for this K tile (bf16 x bf16 -> f32 on the MXU).
    acc_ref[...] += jnp.dot(x_ref[...], w1_ref[...],
                            preferred_element_type=jnp.float32)

    @pl.when(k == pl.num_programs(1) - 1)
    def _():
        h1 = jnp.maximum(acc_ref[...] + b1_ref[...], 0.0)
        h2 = jnp.dot(h1.astype(w2_ref.dtype), w2_ref[...],
                     preferred_element_type=jnp.float32) + b2_ref[...]
        h2 = jnp.maximum(h2, 0.0)
        logits = jnp.dot(h2.astype(w3_ref.dtype), w3_ref[...],
                         preferred_element_type=jnp.float32) + b3_ref[...]
        out_ref[...] = logits.astype(out_ref.dtype)


def image_classifier_forward(x_nchw, params, *, tk=None,
                             compute_dtype=jnp.bfloat16):
    """x_nchw: (B, C, H, W) float32. Returns logits (B, NUM_CLASSES) float32."""
    w1, b1, w2, b2, w3, b3 = params
    B = x_nchw.shape[0]
    K = w1.shape[0]
    C = w3.shape[1]

    # nn.Flatten(): (B, C, H, W) -> (B, C*H*W), row-major (same as PyTorch).
    x_flat = x_nchw.reshape(B, -1).astype(compute_dtype)

    # --- tiling choices -----------------------------------------------------
    # K tile: keep 2 x (tk x HIDDEN) bf16 W1 buffers well under the ~32 MiB
    # scoped VMEM budget (v7x-safe; v5e/v6e have more headroom).
    if tk is None:
        tk = 256 if K <= 2048 else 4096
    tk = min(tk, _round_up(K, 128))          # tk must be a multiple of 128
    K_pad = _round_up(K, tk)

    B_pad = _round_up(max(B, 8), 8)          # sublane-align the batch
    if B_pad > 128:
        bm = 128
        B_pad = _round_up(B, bm)
    else:
        bm = B_pad

    C_pad = _round_up(C, 128)                # lane-dense output store

    # --- zero-pad operands (exact for matmul + bias + relu) -----------------
    x_p = jnp.zeros((B_pad, K_pad), compute_dtype).at[:B, :K].set(x_flat)
    w1_p = (jnp.zeros((K_pad, HIDDEN), compute_dtype)
            .at[:K, :].set(w1.astype(compute_dtype)))
    w2_p = w2.astype(compute_dtype)
    w3_p = (jnp.zeros((HIDDEN, C_pad), compute_dtype)
            .at[:, :C].set(w3.astype(compute_dtype)))
    b1_p = b1.astype(jnp.float32)
    b2_p = b2.astype(jnp.float32)
    b3_p = jnp.zeros((1, C_pad), jnp.float32).at[:, :C].set(
        b3.astype(jnp.float32))

    grid = (B_pad // bm, K_pad // tk)        # reduction (K) axis last

    in_specs = [
        pl.BlockSpec((bm, tk), lambda i, k: (i, k)),          # x tile
        pl.BlockSpec((tk, HIDDEN), lambda i, k: (k, 0)),      # W1 streamed
        pl.BlockSpec((1, HIDDEN), lambda i, k: (0, 0)),       # b1 (resident)
        pl.BlockSpec((HIDDEN, HIDDEN), lambda i, k: (0, 0)),  # W2 (resident)
        pl.BlockSpec((1, HIDDEN), lambda i, k: (0, 0)),       # b2
        pl.BlockSpec((HIDDEN, C_pad), lambda i, k: (0, 0)),   # W3 (resident)
        pl.BlockSpec((1, C_pad), lambda i, k: (0, 0)),        # b3
    ]
    out_spec = pl.BlockSpec((bm, C_pad), lambda i, k: (i, 0))

    itemsize = jnp.dtype(compute_dtype).itemsize
    flops = 2 * B_pad * (K_pad * HIDDEN + HIDDEN * HIDDEN + HIDDEN * C_pad)
    bytes_accessed = ((x_p.size + w1_p.size + w2_p.size + w3_p.size) * itemsize
                      + (b1_p.size + b2_p.size + b3_p.size) * 4
                      + B_pad * C_pad * 4)
    cost = pl.CostEstimate(flops=flops, transcendentals=0,
                           bytes_accessed=bytes_accessed)

    out = pl.pallas_call(
        _mlp_kernel,
        out_shape=jax.ShapeDtypeStruct((B_pad, C_pad), jnp.float32),
        grid_spec=pltpu.PrefetchScalarGridSpec(
            num_scalar_prefetch=0,
            grid=grid,
            in_specs=in_specs,
            out_specs=out_spec,
            scratch_shapes=[pltpu.VMEM((bm, HIDDEN), jnp.float32)],
        ),
        compiler_params=pltpu.CompilerParams(
            dimension_semantics=("parallel", "arbitrary"),
            vmem_limit_bytes=32 << 20,
        ),
        cost_estimate=cost,
    )(x_p, w1_p, b1_p, w2_p, b2_p, w3_p, b3_p)

    return out[:B, :C]


def init_params(key):
    """Deterministic init mimicking nn.Linear's uniform(-1/sqrt(fan_in), +...).
    Weights stored as (in, out) so the kernel computes x @ W + b (same math as
    PyTorch's x @ W.T + b with W of shape (out, in))."""
    ks = jax.random.split(key, 6)

    def linear(kw, kb, fan_in, fan_out):
        bound = 1.0 / jnp.sqrt(jnp.float32(fan_in))
        w = jax.random.uniform(kw, (fan_in, fan_out), jnp.float32, -bound, bound)
        b = jax.random.uniform(kb, (1, fan_out), jnp.float32, -bound, bound)
        return w, b

    w1, b1 = linear(ks[0], ks[1], IN_FEATURES, HIDDEN)
    w2, b2 = linear(ks[2], ks[3], HIDDEN, HIDDEN)
    w3, b3 = linear(ks[4], ks[5], HIDDEN, NUM_CLASSES)
    return (w1, b1, w2, b2, w3, b3)


if __name__ == "__main__":
    key = jax.random.PRNGKey(0)
    k_params, k_x = jax.random.split(key)

    params = init_params(k_params)
    B = 2
    x = jax.random.normal(
        k_x, (B, CHANNELS, IMAGE_SIZE[0], IMAGE_SIZE[1]), dtype=jnp.float32)

    logits = image_classifier_forward(x, params)
    jax.block_until_ready(logits)

    # Reference: same math with bf16-rounded operands and f32 accumulation.
    w1, b1, w2, b2, w3, b3 = params
    bf = lambda a: a.astype(jnp.bfloat16).astype(jnp.float32)
    xf = bf(x.reshape(B, -1))
    h = jnp.maximum(xf @ bf(w1) + b1, 0.0)
    h = jnp.maximum(bf(h) @ bf(w2) + b2, 0.0)
    ref = bf(h) @ bf(w3) + b3

    assert logits.shape == (B, NUM_CLASSES)
    assert jnp.allclose(logits, ref, atol=2e-2, rtol=2e-2), float(
        jnp.max(jnp.abs(logits - ref)))

    print("KERNEL_OK")
</pallas_src>

<mosaic_0001>
module attributes {stable_mosaic.version = 11 : i64} {
  func.func @_mlp_kernel(%arg0: i32, %arg1: i32, %arg2: memref<8x256xbf16, #tpu.memory_space<vmem>>, %arg3: memref<256x512xbf16, #tpu.memory_space<vmem>>, %arg4: memref<1x512xf32, #tpu.memory_space<vmem>>, %arg5: memref<512x512xbf16, #tpu.memory_space<vmem>>, %arg6: memref<1x512xf32, #tpu.memory_space<vmem>>, %arg7: memref<512x128xbf16, #tpu.memory_space<vmem>>, %arg8: memref<1x128xf32, #tpu.memory_space<vmem>>, %arg9: memref<8x128xf32, #tpu.memory_space<vmem>>, %arg10: memref<8x512xf32, #tpu.memory_space<vmem>>) attributes {dimension_semantics = [#tpu.dimension_semantics<parallel>, #tpu.dimension_semantics<arbitrary>], iteration_bounds = array<i64: 1, 3>, scalar_prefetch = 0 : i64, scratch_operands = 1 : i64, tpu.core_type = #tpu.core_type<tc>, window_params = [{transform_indices = @transform_0, window_bounds = array<i64: 8, 256>}, {transform_indices = @transform_1, window_bounds = array<i64: 256, 512>}, {pipeline_mode = #tpu.pipeline_mode<synchronous>, transform_indices = @transform_2, window_bounds = array<i64: 1, 512>}, {pipeline_mode = #tpu.pipeline_mode<synchronous>, transform_indices = @transform_3, window_bounds = array<i64: 512, 512>}, {pipeline_mode = #tpu.pipeline_mode<synchronous>, transform_indices = @transform_4, window_bounds = array<i64: 1, 512>}, {pipeline_mode = #tpu.pipeline_mode<synchronous>, transform_indices = @transform_5, window_bounds = array<i64: 512, 128>}, {pipeline_mode = #tpu.pipeline_mode<synchronous>, transform_indices = @transform_6, window_bounds = array<i64: 1, 128>}, {transform_indices = @transform_7, window_bounds = array<i64: 8, 128>}]} {
    %c0_i32 = arith.constant 0 : i32
    %0 = arith.cmpi eq, %arg1, %c0_i32 : i32
    %1 = arith.extui %0 : i1 to i32
    %c0_i32_0 = arith.constant 0 : i32
    %2 = arith.cmpi ne, %1, %c0_i32_0 : i32
    scf.if %2 {
      %cst_9 = arith.constant 0.000000e+00 : f32
      %12 = vector.broadcast %cst_9 : f32 to vector<8x512xf32>
      %c0_10 = arith.constant 0 : index
      %c0_11 = arith.constant 0 : index
      %13 = vector.load %arg10[%c0_10, %c0_11] : memref<8x512xf32, #tpu.memory_space<vmem>>, vector<8x512xf32>
      tpu.vector_store %arg10[%c0_10, %c0_11], %12 {strides = array<i32>} : memref<8x512xf32, #tpu.memory_space<vmem>>, vector<8x512xf32>,
    } else {
    }
    %c0 = arith.constant 0 : index
    %c0_1 = arith.constant 0 : index
    %3 = vector.load %arg10[%c0, %c0_1] : memref<8x512xf32, #tpu.memory_space<vmem>>, vector<8x512xf32>
    %c0_2 = arith.constant 0 : index
    %c0_3 = arith.constant 0 : index
    %4 = vector.load %arg2[%c0_2, %c0_3] : memref<8x256xbf16, #tpu.memory_space<vmem>>, vector<8x256xbf16>
    %c0_4 = arith.constant 0 : index
    %c0_5 = arith.constant 0 : index
    %5 = vector.load %arg3[%c0_4, %c0_5] : memref<256x512xbf16, #tpu.memory_space<vmem>>, vector<256x512xbf16>
    %cst = arith.constant dense<0.000000e+00> : vector<8x512xf32>
    %6 = tpu.matmul %4, %5, %cst {dimension_numbers = #tpu.dot_dimension_numbers<[1], [0], [0], [1], [0, 0, 1, 1], [], []>} : vector<8x256xbf16>, vector<256x512xbf16>, vector<8x512xf32> -> vector<8x512xf32>
    %7 = arith.addf %3, %6 : vector<8x512xf32>
    %c0_6 = arith.constant 0 : index
    %c0_7 = arith.constant 0 : index
    %8 = vector.load %arg10[%c0_6, %c0_7] : memref<8x512xf32, #tpu.memory_space<vmem>>, vector<8x512xf32>
    tpu.vector_store %arg10[%c0_6, %c0_7], %7 {strides = array<i32>} : memref<8x512xf32, #tpu.memory_space<vmem>>, vector<8x512xf32>,
    %c2_i32 = arith.constant 2 : i32
    %9 = arith.cmpi eq, %arg1, %c2_i32 : i32
    %10 = arith.extui %9 : i1 to i32
    %c0_i32_8 = arith.constant 0 : i32
    %11 = arith.cmpi ne, %10, %c0_i32_8 : i32
    scf.if %11 {
      %c0_9 = arith.constant 0 : index
      %c0_10 = arith.constant 0 : index
      %12 = vector.load %arg10[%c0_9, %c0_10] : memref<8x512xf32, #tpu.memory_space<vmem>>, vector<8x512xf32>
      %c0_11 = arith.constant 0 : index
      %c0_12 = arith.constant 0 : index
      %13 = vector.load %arg4[%c0_11, %c0_12] : memref<1x512xf32, #tpu.memory_space<vmem>>, vector<1x512xf32>
      %14 = vector.broadcast %13 : vector<1x512xf32> to vector<8x512xf32>
      %15 = arith.addf %12, %14 : vector<8x512xf32>
      %cst_13 = arith.constant 0.000000e+00 : f32
      %16 = vector.broadcast %cst_13 : f32 to vector<8x512xf32>
      %17 = arith.maximumf %15, %16 : vector<8x512xf32>
      %18 = arith.truncf %17 : vector<8x512xf32> to vector<8x512xbf16>
      %c0_14 = arith.constant 0 : index
      %c0_15 = arith.constant 0 : index
      %19 = vector.load %arg5[%c0_14, %c0_15] : memref<512x512xbf16, #tpu.memory_space<vmem>>, vector<512x512xbf16>
      %cst_16 = arith.constant dense<0.000000e+00> : vector<8x512xf32>
      %20 = tpu.matmul %18, %19, %cst_16 {dimension_numbers = #tpu.dot_dimension_numbers<[1], [0], [0], [1], [0, 0, 1, 1], [], []>} : vector<8x512xbf16>, vector<512x512xbf16>, vector<8x512xf32> -> vector<8x512xf32>
      %c0_17 = arith.constant 0 : index
      %c0_18 = arith.constant 0 : index
      %21 = vector.load %arg6[%c0_17, %c0_18] : memref<1x512xf32, #tpu.memory_space<vmem>>, vector<1x512xf32>
      %22 = vector.broadcast %21 : vector<1x512xf32> to vector<8x512xf32>
      %23 = arith.addf %20, %22 : vector<8x512xf32>
      %cst_19 = arith.constant 0.000000e+00 : f32
      %24 = vector.broadcast %cst_19 : f32 to vector<8x512xf32>
      %25 = arith.maximumf %23, %24 : vector<8x512xf32>
      %26 = arith.truncf %25 : vector<8x512xf32> to vector<8x512xbf16>
      %c0_20 = arith.constant 0 : index
      %c0_21 = arith.constant 0 : index
      %27 = vector.load %arg7[%c0_20, %c0_21] : memref<512x128xbf16, #tpu.memory_space<vmem>>, vector<512x128xbf16>
      %cst_22 = arith.constant dense<0.000000e+00> : vector<8x128xf32>
      %28 = tpu.matmul %26, %27, %cst_22 {dimension_numbers = #tpu.dot_dimension_numbers<[1], [0], [0], [1], [0, 0, 1, 1], [], []>} : vector<8x512xbf16>, vector<512x128xbf16>, vector<8x128xf32> -> vector<8x128xf32>
      %c0_23 = arith.constant 0 : index
      %c0_24 = arith.constant 0 : index
      %29 = vector.load %arg8[%c0_23, %c0_24] : memref<1x128xf32, #tpu.memory_space<vmem>>, vector<1x128xf32>
      %30 = vector.broadcast %29 : vector<1x128xf32> to vector<8x128xf32>
      %31 = arith.addf %28, %30 : vector<8x128xf32>
      %c0_25 = arith.constant 0 : index
      %c0_26 = arith.constant 0 : index
      %32 = vector.load %arg9[%c0_25, %c0_26] : memref<8x128xf32, #tpu.memory_space<vmem>>, vector<8x128xf32>
      tpu.vector_store %arg9[%c0_25, %c0_26], %31 {strides = array<i32>} : memref<8x128xf32, #tpu.memory_space<vmem>>, vector<8x128xf32>,
    } else {
    }
    return
  }
  func.func @transform_0(%arg0: i32, %arg1: i32) -> (i32, i32) {
    %c0_i32 = arith.constant 0 : i32
    return %arg0, %arg1 : i32, i32
  }
  func.func @transform_1(%arg0: i32, %arg1: i32) -> (i32, i32) {
    %c0_i32 = arith.constant 0 : i32
    %c0_i32_0 = arith.constant 0 : i32
    return %arg1, %c0_i32 : i32, i32
  }
  func.func @transform_2(%arg0: i32, %arg1: i32) -> (i32, i32) {
    %c0_i32 = arith.constant 0 : i32
    %c0_i32_0 = arith.constant 0 : i32
    %c0_i32_1 = arith.constant 0 : i32
    return %c0_i32, %c0_i32_0 : i32, i32
  }
  func.func @transform_3(%arg0: i32, %arg1: i32) -> (i32, i32) {
    %c0_i32 = arith.constant 0 : i32
    %c0_i32_0 = arith.constant 0 : i32
    %c0_i32_1 = arith.constant 0 : i32
    return %c0_i32, %c0_i32_0 : i32, i32
  }
  func.func @transform_4(%arg0: i32, %arg1: i32) -> (i32, i32) {
    %c0_i32 = arith.constant 0 : i32
    %c0_i32_0 = arith.constant 0 : i32
    %c0_i32_1 = arith.constant 0 : i32
    return %c0_i32, %c0_i32_0 : i32, i32
  }
  func.func @transform_5(%arg0: i32, %arg1: i32) -> (i32, i32) {
    %c0_i32 = arith.constant 0 : i32
    %c0_i32_0 = arith.constant 0 : i32
    %c0_i32_1 = arith.constant 0 : i32
    return %c0_i32, %c0_i32_0 : i32, i32
  }
  func.func @transform_6(%arg0: i32, %arg1: i32) -> (i32, i32) {
    %c0_i32 = arith.constant 0 : i32
    %c0_i32_0 = arith.constant 0 : i32
    %c0_i32_1 = arith.constant 0 : i32
    return %c0_i32, %c0_i32_0 : i32, i32
  }
  func.func @transform_7(%arg0: i32, %arg1: i32) -> (i32, i32) {
    %c0_i32 = arith.constant 0 : i32
    %c0_i32_0 = arith.constant 0 : i32
    return %arg0, %c0_i32 : i32, i32
  }
}

</mosaic_0001>

<bundles_post_ra>
// kernel: tpu_custom_call.1
= control target key start
LH: loop header
LB: loop body
LE: loop exit
PB: predicated region body
PF: predicated region fallthrough
CT: control target
= control target key end

     0   :  { %s3692_s0 = inlined_call_operand.hbm [shape: bf16[8,768], index: 0, kind: input, shape index: {}]   ;;  %s3693_s1 = inlined_call_operand.hbm [shape: bf16[768,512], index: 1, kind: input, shape index: {}]   ;;  %s3694_s2 = inlined_call_operand.vmem [shape: f32[1,512], index: 2, kind: input, shape index: {}]   ;;  %s3695_s3 = inlined_call_operand.hbm [shape: bf16[512,512], index: 3, kind: input, shape index: {}]   ;;  %s3696_s4 = inlined_call_operand.vmem [shape: f32[1,512], index: 4, kind: input, shape index: {}]   ;;  %s3697_s5 = inlined_call_operand.hbm [shape: bf16[512,128], index: 5, kind: input, shape index: {}]   ;;  %s3698_s6 = inlined_call_operand.vmem [shape: f32[1,128], index: 6, kind: input, shape index: {}]   ;;  %s3699_s7 = inlined_call_operand.hbm [shape: f32[8,128], index: 7, kind: output, shape index: {}]  }
   0x1   :  { %3705 = sst [smem:[#allocation17_spill]] %s3692_s0 }
   0x2   :  { %3706 = sst [smem:[#allocation18_spill]] %s3695_s3 }
   0x3   :  { %12 = vsyncpa [#allocation4], 0 }
   0x4   :  { %14 = vsyncpa [#allocation4 + $0x1], 0 }
   0x5   :  { %15 = vsyncpa [#allocation7], 0 }
   0x6   :  { %17 = vsyncpa [#allocation7 + $0x1], 0 }
   0x7   :  { %18 = vsyncpa [#allocation10], 0 }
   0x8   :  { %19 = vsyncpa [#allocation5], 0  ;;  %s3318_s24 = smov 0   ;;  %s3320_s25 = smov 0  }
   0x9   :  { %s3322_s26 = smov 0   ;;  %s3324_s27 = smov 0  }
   0xa   :  { %s3326_s28 = smov 0   ;;  %s3328_s29 = smov 0  }
   0xb LB: > { %s3347_s30 = sadd.s32 4294967295, %s3266_s29   ;;  %p59_p0 = scmp.ne.s32.totalorder %s3250_s25, %s3246_s24  ;;  %s3266_s29 = sphi %s3328_s29, %s25_s29   ;;  %s3262_s28 = sphi %s3326_s28, %s3726_s28   ;;  %s3258_s27 = sphi %s3324_s27, %s3725_s27   ;;  %s3254_s26 = sphi %s3322_s26, %s3724_s26   ;;  %s3250_s25 = sphi %s3320_s25, %s3723_s25   ;;  %s3246_s24 = sphi %s3318_s24, %s3722_s24  }
   0xc   : > { %p3700_p1 = scmp.eq.s32.totalorder %s3347_s30, 0  ;;  %p2335_p2 = scmp.ge.s32.totalorder %s3266_s29, 1 }
   0xd   : > { %p227_p3 = scmp.lt.s32.totalorder %s3266_s29, 4  ;;  %s3268_s10 = smov [#allocation8]  }
   0xe   : > { %p3355_p4 = por %p3700_p1, %p59_p0  ;;  %s242_s11 = sshll.u32 %s3268_s10, 4  ;;  %s243_s11 = int_to_ptr.vmem [resolvable:$true] %s242_s11 }
   0xf   : > { %p3359_p5 = pnand %p2335_p2, %p227_p3  ;;  %s3269_s13 = smov [#allocation9]  }
  0x10   : > { %s3707_s8 = scalar_select %p3355_p4, 1, 0 }
  0x11   : > { %s3708_s9 = scalar_select %p3359_p5, 1, 0 }
  0x12   : > { %p2659_p6 = pneg %p3359_p5  ;;  %s258_s14 = sshll.u32 %s3269_s13, 4  ;;  %s3371_s14 = int_to_ptr.vmem [resolvable:$true] %s258_s14 }
  0x13   : > { %s3710_s3 = sld [smem:[#allocation18_spill]] }
  0x14   : > { %p3367_p7 = pnand %p2659_p6, %p3700_p1 }
  0x16   : > { %p3060_p9 = pneg %p3367_p7 }
  0x19   : > { %s3058_s17 = scalar_lea.hbm %s3710_s3, 16384 }
  0x1a   : > { %p3059_p8 = scmp.ne.s32.totalorder %s3710_s3, %s3058_s17  ;;  %p3065_p12 = scmp.lt.u32.totalorder %s3058_s17, %s3710_s3 }
  0x1c   : > { %p3061_p10 = pnand %p3060_p9, %p3059_p8 }
  0x1e   : > { %p3062_p11 = pneg %p3061_p10 }
  0x20   : > { %p3067_p13 = pnand %p3065_p12, %p3062_p11 }
  0x22   : > { %3070 = shalt.err (!%p3067_p13)
}
  0x23   : > { %s3071_s22 = scalar_lea.vmem %s243_s11, 16384  ;;  %p3079_p6 = scmp.lt.s32.totalorder %s243_s11, %s243_s11 }
  0x24   : > { %p3072_p0 = scmp.ne.s32.totalorder %s243_s11, %s3071_s22  ;;  %p3080_p1 = scmp.lt.s32.totalorder %s3071_s22, %s3071_s22 }
  0x26   : > { %p3074_p2 = pnand %p3072_p0, %p3060_p9  ;;  %p3081_p4 = por %p3080_p1, %p3079_p6 }
  0x28   : > { %p3075_p3 = pneg %p3074_p2 }
  0x2a   : > { %p3082_p5 = pnand %p3081_p4, %p3075_p3 }
  0x2c   : > { %3085 = shalt.err (!%p3082_p5)
}
  0x2d   : > { %s3703_s23 = smov 256   ;;  %s3704_s24 = smov 16  }
  0x2e   : > { %2662 = dma.hbm_to_vmem [thread:$0]  (!%p3367_p7), %s3710_s3, 16384, %s243_s11, [#allocation7], %s3703_s23, %s3703_s23, %s3704_s24  }
  0x2f   : > { %s3086_s17 = scalar_lea.hbm %s3697_s5, 4096 }
  0x30   : > { %p3087_p1 = scmp.ne.s32.totalorder %s3697_s5, %s3086_s17  ;;  %p3093_p8 = scmp.lt.u32.totalorder %s3086_s17, %s3697_s5 }
  0x32   : > { %p3089_p4 = pnand %p3087_p1, %p3060_p9 }
  0x34   : > { %p3090_p5 = pneg %p3089_p4 }
  0x36   : > { %p3095_p10 = pnand %p3093_p8, %p3090_p5 }
  0x38   : > { %3098 = shalt.err (!%p3095_p10)
}
  0x39   : > { %s3099_s11 = scalar_lea.vmem %s3371_s14, 4096  ;;  %p3107_p0 = scmp.lt.s32.totalorder %s3371_s14, %s3371_s14 }
  0x3a   : > { %p3100_p11 = scmp.ne.s32.totalorder %s3371_s14, %s3099_s11  ;;  %p3108_p2 = scmp.lt.s32.totalorder %s3099_s11, %s3099_s11 }
  0x3c   : > { %p3102_p12 = pnand %p3100_p11, %p3060_p9  ;;  %p3109_p3 = por %p3108_p2, %p3107_p0 }
  0x3e   : > { %p3103_p13 = pneg %p3102_p12 }
  0x40   : > { %p3110_p6 = pnand %p3109_p3, %p3103_p13 }
  0x42   : > { %3113 = shalt.err (!%p3110_p6)
}
  0x43   : > { %s3272_s22 = smov 64   ;;  %s3273_s10 = smov 4  }
  0x44   : > { %2665 = dma.hbm_to_vmem [thread:$0]  (!%p3367_p7), %s3697_s5, 4096, %s3371_s14, [#allocation10], %s3272_s22, %s3272_s22, %s3273_s10  }
  0x45   : > { %s34_s16 = sadd.s32 1, %s3262_s28  ;;  %s46_s17 = sadd.s32 1, %s3254_s26 }
  0x46   : > { %p35_p9 = scmp.ge.s32.totalorder %s34_s16, 3  ;;  %p53_p1 = scmp.ne.s32.totalorder %s3254_s26, %s3250_s25 }
  0x47   : > { %p54_p4 = scmp.eq.s32.totalorder %s3266_s29, 0  ;;  %p2675_p5 = scmp.lt.s32.totalorder %s3266_s29, 3 }
  0x48   : > { %s3728_s16 = smov (%p35_p9, %s34_s16), 0  ;;  %s3432_s18 = sand.u32 1, %s3254_s26  }
  0x49   : > { %p55_p8 = por %p54_p4, %p53_p1  ;;  %s42_s12 = ssub.s32 %s3262_s28, %s3728_s16 }
  0x4a   : > { %p44_p10 = scmp.eq.s32.totalorder %s42_s12, 0  ;;  %s2339_s14 = sshll.u32 %s3432_s18, 3 }
  0x4b   : > { %s2584_s19 = sshll.u32 %s3262_s28, 7  ;;  %s3711_s0 = sld [smem:[#allocation17_spill]] }
  0x4c   : > { %s3439_s20 = scalar_select %p44_p10, %s3254_s26, %s46_s17  }
  0x4d   : > { %s279_s10 = scalar_lea.vmem [#allocation3], %s2339_s14  ;;  %p3450_p7 = pnand %p2675_p5, %p55_p8 }
  0x4e   : > { %s289_s13 = sshll.u32 %s279_s10, 4  ;;  %s2342_s17 = sshll.u32 %s3432_s18, 9  ;;  %s3446_s13 = int_to_ptr.vmem [resolvable:$true] %s289_s13 }
  0x4f   : > { %s276_s21 = scalar_lea.sflag [#allocation4], %s3432_s18  ;;  %p3116_p12 = pneg %p3450_p7 }
  0x51   : > { %s3444_s22 = scalar_lea.hbm %s3711_s0, %s2584_s19  ;;  %s3119_s10 = scalar_lea.hbm %s3711_s0, 384 }
  0x52   : > { %s3114_s19 = scalar_lea.hbm %s3444_s22, 128  ;;  %p3120_p2 = scmp.lt.u32.totalorder %s3444_s22, %s3711_s0 }
  0x53   : > { %p3115_p11 = scmp.ne.s32.totalorder %s3444_s22, %s3114_s19  ;;  %p3121_p3 = scmp.lt.u32.totalorder %s3119_s10, %s3114_s19 }
  0x54   : > { %p3123_p9 = scmp.lt.u32.totalorder %s3114_s19, %s3444_s22 }
  0x55   : > { %p3117_p13 = pnand %p3116_p12, %p3115_p11  ;;  %p3122_p6 = por %p3121_p3, %p3120_p2 }
  0x57   : > { %p3118_p0 = pneg %p3117_p13  ;;  %p3124_p1 = por %p3123_p9, %p3122_p6 }
  0x59   : > { %p3125_p4 = pnand %p3124_p1, %p3118_p0 }
  0x5b   : > { %3128 = shalt.err (!%p3125_p4)
}
  0x5c   : > { %s3129_s12 = scalar_lea.vmem %s3446_s13, 128  ;;  %s3274_s14 = smov [#allocation3]  }
  0x5d   : > { %p3130_p5 = scmp.ne.s32.totalorder %s3446_s13, %s3129_s12  ;;  %s3134_s11 = sshll.u32 %s3274_s14, 4  ;;  %s3135_s11 = int_to_ptr.vmem [resolvable:$false] %s3134_s11 }
  0x5e   : > { %s3136_s23 = scalar_lea.vmem %s3135_s11, 256  ;;  %p3137_p11 = scmp.lt.s32.totalorder %s3446_s13, %s3135_s11 }
  0x5f   : > { %p3132_p8 = pnand %p3130_p5, %p3116_p12  ;;  %p3138_p13 = scmp.lt.s32.totalorder %s3136_s23, %s3129_s12 }
  0x61   : > { %p3133_p10 = pneg %p3132_p8  ;;  %p3139_p2 = por %p3138_p13, %p3137_p11 }
  0x63   : > { %p3140_p3 = pnand %p3139_p2, %p3133_p10 }
  0x65   : > { %3143 = shalt.err (!%p3140_p3)
}
  0x66   : > { %2669 = dma.hbm_to_vmem [thread:$0]  (!%p3450_p7), %s3444_s22, 128, %s3446_s13, %s276_s21  }
  0x67   : > { %s300_s24 = scalar_lea.vmem [#allocation6], %s2342_s17  ;;  %s296_s10 = sand.u32 1, %s3266_s29  }
  0x68   : > { %s308_s19 = sshll.u32 %s300_s24, 4  ;;  %s3713_s14 = sshll.u32 %s3262_s28, 13  ;;  %s3485_s19 = int_to_ptr.vmem [resolvable:$true] %s308_s19 }
  0x69   : > { %s3492_s23 = scalar_lea.hbm %s3693_s1, %s3713_s14  ;;  %s3494_s0 = scalar_lea.sflag [#allocation7], %s296_s10 }
  0x6a   : > { %s3144_s3 = scalar_lea.hbm %s3492_s23, 8192  ;;  %s3149_s13 = scalar_lea.hbm %s3693_s1, 24576 }
  0x6b   : > { %p3145_p0 = scmp.ne.s32.totalorder %s3492_s23, %s3144_s3  ;;  %p3150_p1 = scmp.lt.u32.totalorder %s3492_s23, %s3693_s1 }
  0x6c   : > { %p3151_p4 = scmp.lt.u32.totalorder %s3149_s13, %s3144_s3  ;;  %p3153_p8 = scmp.lt.u32.totalorder %s3144_s3, %s3492_s23 }
  0x6d   : > { %p3147_p6 = pnand %p3145_p0, %p3116_p12 }
  0x6e   : > { %p3152_p5 = por %p3151_p4, %p3150_p1 }
  0x6f   : > { %p3148_p9 = pneg %p3147_p6 }
  0x70   : > { %p3154_p10 = por %p3153_p8, %p3152_p5 }
  0x72   : > { %p3155_p11 = pnand %p3154_p10, %p3148_p9 }
  0x74   : > { %3158 = shalt.err (!%p3155_p11)
}
  0x75   : > { %s3159_s24 = scalar_lea.vmem %s3485_s19, 8192  ;;  %s3275_s10 = smov [#allocation6]  }
  0x76   : > { %p3160_p13 = scmp.ne.s32.totalorder %s3485_s19, %s3159_s24  ;;  %s3164_s14 = sshll.u32 %s3275_s10, 4  ;;  %s3165_s14 = int_to_ptr.vmem [resolvable:$false] %s3164_s14 }
  0x77   : > { %s3166_s12 = scalar_lea.vmem %s3165_s14, 16384  ;;  %p3167_p0 = scmp.lt.s32.totalorder %s3485_s19, %s3165_s14 }
  0x78   : > { %p3162_p2 = pnand %p3160_p13, %p3116_p12  ;;  %p3168_p6 = scmp.lt.s32.totalorder %s3166_s12, %s3159_s24 }
  0x7a   : > { %p3163_p3 = pneg %p3162_p2  ;;  %p3169_p1 = por %p3168_p6, %p3167_p0 }
  0x7c   : > { %p3170_p4 = pnand %p3169_p1, %p3163_p3 }
  0x7e   : > { %3173 = shalt.err (!%p3170_p4)
}
  0x7f   : > { %s3714_s3 = smov 16   ;;  %s3715_s11 = smov 256  }
  0x80   : > { %2672 = dma.hbm_to_vmem [thread:$0]  (!%p3450_p7), %s3492_s23, 8192, %s3485_s19, %s3494_s0, %s3715_s11, %s3715_s11, %s3714_s3  }
  0x81   : > { %p3716_p12 = scmp.ne.s32.totalorder %s3708_s9, 0 }
  0x82   : > { %s322_s18 = sand.u32 (!%p3716_p12), 1, %s3250_s25   ;;  %p3717_p9 = scmp.ne.s32.totalorder (!%p3716_p12), %s3707_s8, 0 }
  0x83   : > { %320 = sbr.rel (%p3716_p12) target bundleno = 986 (0x3da), region = 48  ;;  %s2347_s22 = sshll.u32 (!%p3716_p12), %s322_s18, 3 }
  0x84   : > { %s323_s13 = scalar_lea.sflag (!%p3716_p12), [#allocation4], %s322_s18  ;;  %s3526_s17 = scalar_lea.vmem (!%p3716_p12), [#allocation3], %s2347_s22 }
  0x8a   : > { %3225 = dma.done.wait (%p3717_p9), %s323_s13, 128  }
  0x8b   : > { %3227 = vsyncadd (%p3717_p9), %s323_s13, 4294967168  ;;  %s331_s15 = sand.u32 1, %s3347_s30   ;;  %s2348_s21 = sshll.u32 %s322_s18, 9 }
  0x8c   : > { %s332_s0 = scalar_lea.sflag [#allocation7], %s331_s15  ;;  %s3533_s19 = scalar_lea.vmem [#allocation6], %s2348_s21 }
  0x8d   : > { %3229 = dma.done.wait (%p3717_p9), %s332_s0, 8192  }
  0x8e   : > { %3231 = vsyncadd (%p3717_p9), %s332_s0, 4294959104  ;;  %p3718_p7 = scmp.eq.s32.totalorder %s3347_s30, 0 }
  0x90   : > { %3233 = dma.done.wait (%p3718_p7), [#allocation7], 16384   ;;  %p3719_p5 = pmov %p3718_p7 }
  0x92   : > { %3235 = vsyncadd (%p3719_p5), [#allocation7], 4294950912  ;;  %p3720_p8 = pmov %p3719_p5 }
  0x93   : > { %p3721_p10 = pmov %p3719_p5 }
  0x94   : > { %3237 = dma.done.wait (%p3720_p8), [#allocation10], 4096  }
  0x95   : > { %3239 = vsyncadd (%p3721_p10), [#allocation10], 4294963200  ;;  %p2351_p11 = scmp.ne.s32.totalorder %s3258_s27, 0 }
  0x96   : > { %v3276_v0 = vmov (!%p2351_p11), 0.0  }
  0x97   : > { %380 = sbr.rel (%p2351_p11) target bundleno = 158 (0x9e), region = 68  ;;  %381 = vst [vmem:[#allocation2] sm:$0xff] (!%p2351_p11), %v3276_v0  ;;  %382 = vst [vmem:[#allocation2 + $0x8] sm:$0xff] (!%p2351_p11), %v3276_v0 }
  0x98   : > { %383 = vst [vmem:[#allocation2 + $0x10] sm:$0xff] (!%p2351_p11), %v3276_v0  ;;  %384 = vst [vmem:[#allocation2 + $0x18] sm:$0xff] (!%p2351_p11), %v3276_v0 }
  0x9e PF: > { %v2736_v1 = vld [vmem:[%s3533_s19 + $0x4] ss:$16 sps:$4 sm:$0xff]   ;;  %v2738_v2 = vld [vmem:[%s3533_s19 + $0xc] ss:$16 sps:$4 sm:$0xff]   ;;  %v2740_v3 = vld [vmem:[%s3533_s19] ss:$16 sps:$4 sm:$0xff]  }
  0x9f   : > { %781 = vmatprep.subr.bf16.mxu0 %v2736_v1  ;;  %v2741_v4 = vld [vmem:[%s3533_s19 + $0x8] ss:$16 sps:$4 sm:$0xff]   ;;  %822 = vmatprep.subr.bf16.mxu1 %v2738_v2  ;;  %v2742_v5 = vld [vmem:[%s3533_s19 + $0x24] ss:$16 sps:$4 sm:$0xff]   ;;  %v2744_v6 = vld [vmem:[%s3533_s19 + $0x2c] ss:$16 sps:$4 sm:$0xff]  }
  0xa0   : > { %782 = vmatpush1.bf16.msra.mxu0 %v2740_v3  ;;  %823 = vmatpush1.bf16.msra.mxu1 %v2741_v4  ;;  %v2746_v7 = vld [vmem:[%s3533_s19 + $0x20] ss:$16 sps:$4 sm:$0xff]   ;;  %v2747_v8 = vld [vmem:[%s3533_s19 + $0x28] ss:$16 sps:$4 sm:$0xff]   ;;  %v2748_v9 = vld [vmem:[%s3533_s19 + $0x44] ss:$16 sps:$4 sm:$0xff]  }
  0xa1   : > { %783 = vmatprep.subr.bf16.mxu0 %v2742_v5  ;;  %824 = vmatprep.subr.bf16.mxu1 %v2744_v6  ;;  %v2750_v10 = vld [vmem:[%s3533_s19 + $0x4c] ss:$16 sps:$4 sm:$0xff]   ;;  %v2752_v11 = vld [vmem:[%s3533_s19 + $0x40] ss:$16 sps:$4 sm:$0xff]   ;;  %v2753_v12 = vld [vmem:[%s3533_s19 + $0x48] ss:$16 sps:$4 sm:$0xff]  }
  0xa2   : > { %v2754_v13 = vld [vmem:[%s3533_s19 + $0x64] ss:$16 sps:$4 sm:$0xff]   ;;  %v2756_v14 = vld [vmem:[%s3533_s19 + $0x6c] ss:$16 sps:$4 sm:$0xff]   ;;  %v2758_v15 = vld [vmem:[%s3533_s19 + $0x60] ss:$16 sps:$4 sm:$0xff]  }
  0xa3   : > { %v2759_v16 = vld [vmem:[%s3533_s19 + $0x68] ss:$16 sps:$4 sm:$0xff]   ;;  %v2760_v17 = vld [vmem:[%s3533_s19 + $0x84] ss:$16 sps:$4 sm:$0xff]   ;;  %v2762_v18 = vld [vmem:[%s3533_s19 + $0x8c] ss:$16 sps:$4 sm:$0xff]  }
  0xa4   : > { %784 = vmatpush1.bf16.msra.mxu0 %v2746_v7  ;;  %825 = vmatpush1.bf16.msra.mxu1 %v2747_v8  ;;  %v2764_v19 = vld [vmem:[%s3533_s19 + $0x80] ss:$16 sps:$4 sm:$0xff]   ;;  %v2765_v20 = vld [vmem:[%s3533_s19 + $0x88] ss:$16 sps:$4 sm:$0xff]   ;;  %v2766_v21 = vld [vmem:[%s3533_s19 + $0xa4] ss:$16 sps:$4 sm:$0xff]  }
  0xa5   : > { %785 = vmatprep.subr.bf16.mxu0 %v2748_v9  ;;  %826 = vmatprep.subr.bf16.mxu1 %v2750_v10  ;;  %v2768_v22 = vld [vmem:[%s3533_s19 + $0xac] ss:$16 sps:$4 sm:$0xff]   ;;  %v2770_v23 = vld [vmem:[%s3533_s19 + $0xa0] ss:$16 sps:$4 sm:$0xff]   ;;  %v2771_v24 = vld [vmem:[%s3533_s19 + $0xa8] ss:$16 sps:$4 sm:$0xff]  }
  0xa6   : > { %v2772_v25 = vld [vmem:[%s3533_s19 + $0xc4] ss:$16 sps:$4 sm:$0xff]   ;;  %v2774_v26 = vld [vmem:[%s3533_s19 + $0xcc] ss:$16 sps:$4 sm:$0xff]   ;;  %v2776_v27 = vld [vmem:[%s3533_s19 + $0xc0] ss:$16 sps:$4 sm:$0xff]  }
  0xa7   : > { %v2777_v28 = vld [vmem:[%s3533_s19 + $0xc8] ss:$16 sps:$4 sm:$0xff]   ;;  %v2778_v29 = vld [vmem:[%s3533_s19 + $0xe4] ss:$16 sps:$4 sm:$0xff]   ;;  %v2780_v30 = vld [vmem:[%s3533_s19 + $0xec] ss:$16 sps:$4 sm:$0xff]  }
  0xa8   : > { %786 = vmatpush1.bf16.msra.mxu0 %v2752_v11  ;;  %827 = vmatpush1.bf16.msra.mxu1 %v2753_v12  ;;  %v2782_v31 = vld [vmem:[%s3533_s19 + $0xe0] ss:$16 sps:$4 sm:$0xff]   ;;  %v2783_v32 = vld [vmem:[%s3533_s19 + $0xe8] ss:$16 sps:$4 sm:$0xff]   ;;  %v2784_v33 = vld [vmem:[%s3533_s19 + $0x104] ss:$16 sps:$4 sm:$0xff]  }
  0xa9   : > { %787 = vmatprep.subr.bf16.mxu0 %v2754_v13  ;;  %828 = vmatprep.subr.bf16.mxu1 %v2756_v14  ;;  %v2786_v34 = vld [vmem:[%s3533_s19 + $0x10c] ss:$16 sps:$4 sm:$0xff]   ;;  %v2788_v35 = vld [vmem:[%s3533_s19 + $0x100] ss:$16 sps:$4 sm:$0xff]   ;;  %v2789_v36 = vld [vmem:[%s3533_s19 + $0x108] ss:$16 sps:$4 sm:$0xff]  }
  0xaa   : > { %v2790_v37 = vld [vmem:[%s3533_s19 + $0x124] ss:$16 sps:$4 sm:$0xff]   ;;  %v2792_v38 = vld [vmem:[%s3533_s19 + $0x12c] ss:$16 sps:$4 sm:$0xff]   ;;  %v2794_v39 = vld [vmem:[%s3533_s19 + $0x120] ss:$16 sps:$4 sm:$0xff]  }
  0xab   : > { %v2795_v40 = vld [vmem:[%s3533_s19 + $0x128] ss:$16 sps:$4 sm:$0xff]   ;;  %v2796_v41 = vld [vmem:[%s3533_s19 + $0x144] ss:$16 sps:$4 sm:$0xff]   ;;  %v2798_v42 = vld [vmem:[%s3533_s19 + $0x14c] ss:$16 sps:$4 sm:$0xff]  }
  0xac   : > { %788 = vmatpush1.bf16.msra.mxu0 %v2758_v15  ;;  %829 = vmatpush1.bf16.msra.mxu1 %v2759_v16  ;;  %v2800_v43 = vld [vmem:[%s3533_s19 + $0x140] ss:$16 sps:$4 sm:$0xff]   ;;  %v2801_v44 = vld [vmem:[%s3533_s19 + $0x148] ss:$16 sps:$4 sm:$0xff]   ;;  %v2802_v45 = vld [vmem:[%s3533_s19 + $0x164] ss:$16 sps:$4 sm:$0xff]  }
  0xad   : > { %789 = vmatprep.subr.bf16.mxu0 %v2760_v17  ;;  %830 = vmatprep.subr.bf16.mxu1 %v2762_v18  ;;  %v2804_v46 = vld [vmem:[%s3533_s19 + $0x16c] ss:$16 sps:$4 sm:$0xff]   ;;  %v2806_v49 = vld [vmem:[%s3533_s19 + $0x160] ss:$16 sps:$4 sm:$0xff]   ;;  %v2807_v50 = vld [vmem:[%s3533_s19 + $0x168] ss:$16 sps:$4 sm:$0xff]  }
  0xae   : > { %v389_v47 = vld [vmem:[%s3526_s17] sm:$0xff]  ;;  %v387_v5 = vld [vmem:[#allocation2 + $0x10] sm:$0xff]  ;;  %v388_v7 = vld [vmem:[#allocation2 + $0x18] sm:$0xff]  ;;  %p2418_p13 = scmp.ne.s32.totalorder %s3258_s27, 2 }
  0xaf   : > { %v2353_v48 = vcombine.high %v389_v47, %v389_v47  ;;  %v2808_v51 = vld [vmem:[%s3533_s19 + $0x184] ss:$16 sps:$4 sm:$0xff]   ;;  %v2810_v52 = vld [vmem:[%s3533_s19 + $0x18c] ss:$16 sps:$4 sm:$0xff]   ;;  %v2812_v53 = vld [vmem:[%s3533_s19 + $0x180] ss:$16 sps:$4 sm:$0xff]   ;;  %v2352_v3 = vcombine.low %v389_v47, %v389_v47 }
  0xb0   : > { %790 = vmatpush1.bf16.msra.mxu0 %v2764_v19  ;;  %831 = vmatpush1.bf16.msra.mxu1 %v2765_v20  ;;  %v2813_v54 = vld [vmem:[%s3533_s19 + $0x188] ss:$16 sps:$4 sm:$0xff]   ;;  %v2814_v55 = vld [vmem:[%s3533_s19 + $0x1a4] ss:$16 sps:$4 sm:$0xff]   ;;  %v2816_v56 = vld [vmem:[%s3533_s19 + $0x1ac] ss:$16 sps:$4 sm:$0xff]  }
  0xb1   : > { %791 = vmatprep.subr.bf16.mxu0 %v2766_v21  ;;  %832 = vmatprep.subr.bf16.mxu1 %v2768_v22  ;;  %v2818_v57 = vld [vmem:[%s3533_s19 + $0x1a0] ss:$16 sps:$4 sm:$0xff]   ;;  %v2819_v58 = vld [vmem:[%s3533_s19 + $0x1a8] ss:$16 sps:$4 sm:$0xff]   ;;  %v2820_v59 = vld [vmem:[%s3533_s19 + $0x1c4] ss:$16 sps:$4 sm:$0xff]  }
  0xb2   : > { %813 = vmatprep.mubr.bf16.mxu0 %v2353_v48  ;;  %854 = vmatprep.mubr.bf16.mxu1 %v2353_v48  ;;  %v2822_v60 = vld [vmem:[%s3533_s19 + $0x1cc] ss:$16 sps:$4 sm:$0xff]   ;;  %v2824_v61 = vld [vmem:[%s3533_s19 + $0x1c0] ss:$16 sps:$4 sm:$0xff]   ;;  %v2825_v62 = vld [vmem:[%s3533_s19 + $0x1c8] ss:$16 sps:$4 sm:$0xff]  }
  0xb3   : > { %v2826_v63 = vld [vmem:[%s3533_s19 + $0x1e4] ss:$16 sps:$4 sm:$0xff]   ;;  %v2828_v0 = vld [vmem:[%s3533_s19 + $0x1ec] ss:$16 sps:$4 sm:$0xff]   ;;  %v2830_v1 = vld [vmem:[%s3533_s19 + $0x1e0] ss:$16 sps:$4 sm:$0xff]  }
  0xb4   : > { %792 = vmatpush1.bf16.msra.mxu0 %v2770_v23  ;;  %833 = vmatpush1.bf16.msra.mxu1 %v2771_v24  ;;  %v2831_v2 = vld [vmem:[%s3533_s19 + $0x1e8] ss:$16 sps:$4 sm:$0xff]   ;;  %v385_v4 = vld [vmem:[#allocation2] sm:$0xff]  ;;  %v2836_v21 = vld [vmem:[#allocation8 + $0xc] ss:$16 sps:$4 sm:$0xff] (!%p2418_p13)  }
  0xb5   : > { %793 = vmatprep.subr.bf16.mxu0 %v2772_v25  ;;  %834 = vmatprep.subr.bf16.mxu1 %v2774_v26  ;;  %v386_v6 = vld [vmem:[#allocation2 + $0x8] sm:$0xff]  ;;  %v2834_v20 = vld [vmem:[#allocation8 + $0x4] ss:$16 sps:$4 sm:$0xff] (!%p2418_p13)   ;;  %v2838_v22 = vld [vmem:[#allocation8] ss:$16 sps:$4 sm:$0xff] (!%p2418_p13)  }
  0xb6   : > { %v2839_v23 = vld [vmem:[#allocation8 + $0x8] ss:$16 sps:$4 sm:$0xff] (!%p2418_p13)   ;;  %v2840_v24 = vld [vmem:[#allocation8 + $0x24] ss:$16 sps:$4 sm:$0xff] (!%p2418_p13)   ;;  %v2842_v25 = vld [vmem:[#allocation8 + $0x2c] ss:$16 sps:$4 sm:$0xff] (!%p2418_p13)  }
  0xb7   : > { %v2844_v26 = vld [vmem:[#allocation8 + $0x20] ss:$16 sps:$4 sm:$0xff] (!%p2418_p13)   ;;  %v2875_v47 = vld [vmem:[#allocation8 + $0xc8] ss:$16 sps:$4 sm:$0xff] (!%p2418_p13)   ;;  %v2876_v48 = vld [vmem:[#allocation8 + $0xe4] ss:$16 sps:$4 sm:$0xff] (!%p2418_p13)  }
  0xb8   : > { %794 = vmatpush1.bf16.msra.mxu0 %v2776_v27  ;;  %835 = vmatpush1.bf16.msra.mxu1 %v2777_v28  ;;  %v2845_v27 = vld [vmem:[#allocation8 + $0x28] ss:$16 sps:$4 sm:$0xff] (!%p2418_p13)   ;;  %v2846_v28 = vld [vmem:[#allocation8 + $0x44] ss:$16 sps:$4 sm:$0xff] (!%p2418_p13)  }
  0xb9   : > { %795 = vmatprep.subr.bf16.mxu0 %v2778_v29  ;;  %836 = vmatprep.subr.bf16.mxu1 %v2780_v30  ;;  %v2848_v29 = vld [vmem:[#allocation8 + $0x4c] ss:$16 sps:$4 sm:$0xff] (!%p2418_p13)   ;;  %v2850_v30 = vld [vmem:[#allocation8 + $0x40] ss:$16 sps:$4 sm:$0xff] (!%p2418_p13)  }
  0xbc   : > { %796 = vmatpush1.bf16.msra.mxu0 %v2782_v31  ;;  %837 = vmatpush1.bf16.msra.mxu1 %v2783_v32  ;;  %v2851_v31 = vld [vmem:[#allocation8 + $0x48] ss:$16 sps:$4 sm:$0xff] (!%p2418_p13)   ;;  %v2852_v32 = vld [vmem:[#allocation8 + $0x64] ss:$16 sps:$4 sm:$0xff] (!%p2418_p13)  }
  0xbd   : > { %797 = vmatprep.subr.bf16.mxu0 %v2784_v33  ;;  %838 = vmatprep.subr.bf16.mxu1 %v2786_v34  ;;  %v2854_v33 = vld [vmem:[#allocation8 + $0x6c] ss:$16 sps:$4 sm:$0xff] (!%p2418_p13)   ;;  %v2856_v34 = vld [vmem:[#allocation8 + $0x60] ss:$16 sps:$4 sm:$0xff] (!%p2418_p13)  }
  0xc0   : > { %798 = vmatpush1.bf16.msra.mxu0 %v2788_v35  ;;  %839 = vmatpush1.bf16.msra.mxu1 %v2789_v36  ;;  %v2857_v35 = vld [vmem:[#allocation8 + $0x68] ss:$16 sps:$4 sm:$0xff] (!%p2418_p13)   ;;  %v2858_v36 = vld [vmem:[#allocation8 + $0x84] ss:$16 sps:$4 sm:$0xff] (!%p2418_p13)  }
  0xc1   : > { %799 = vmatprep.subr.bf16.mxu0 %v2790_v37  ;;  %840 = vmatprep.subr.bf16.mxu1 %v2792_v38  ;;  %v2860_v37 = vld [vmem:[#allocation8 + $0x8c] ss:$16 sps:$4 sm:$0xff] (!%p2418_p13)   ;;  %v2862_v38 = vld [vmem:[#allocation8 + $0x80] ss:$16 sps:$4 sm:$0xff] (!%p2418_p13)  }
  0xc4   : > { %800 = vmatpush1.bf16.msra.mxu0 %v2794_v39  ;;  %841 = vmatpush1.bf16.msra.mxu1 %v2795_v40  ;;  %v2863_v39 = vld [vmem:[#allocation8 + $0x88] ss:$16 sps:$4 sm:$0xff] (!%p2418_p13)   ;;  %v2864_v40 = vld [vmem:[#allocation8 + $0xa4] ss:$16 sps:$4 sm:$0xff] (!%p2418_p13)  }
  0xc5   : > { %801 = vmatprep.subr.bf16.mxu0 %v2796_v41  ;;  %842 = vmatprep.subr.bf16.mxu1 %v2798_v42  ;;  %v2866_v41 = vld [vmem:[#allocation8 + $0xac] ss:$16 sps:$4 sm:$0xff] (!%p2418_p13)   ;;  %v2868_v42 = vld [vmem:[#allocation8 + $0xa0] ss:$16 sps:$4 sm:$0xff] (!%p2418_p13)  }
  0xc8   : > { %802 = vmatpush1.bf16.msra.mxu0 %v2800_v43  ;;  %843 = vmatpush1.bf16.msra.mxu1 %v2801_v44  ;;  %v2869_v43 = vld [vmem:[#allocation8 + $0xa8] ss:$16 sps:$4 sm:$0xff] (!%p2418_p13)   ;;  %v2870_v44 = vld [vmem:[#allocation8 + $0xc4] ss:$16 sps:$4 sm:$0xff] (!%p2418_p13)  }
  0xc9   : > { %803 = vmatprep.subr.bf16.mxu0 %v2802_v45  ;;  %844 = vmatprep.subr.bf16.mxu1 %v2804_v46  ;;  %v2872_v45 = vld [vmem:[#allocation8 + $0xcc] ss:$16 sps:$4 sm:$0xff] (!%p2418_p13)   ;;  %v2874_v46 = vld [vmem:[#allocation8 + $0xc0] ss:$16 sps:$4 sm:$0xff] (!%p2418_p13)  }
  0xcc   : > { %804 = vmatpush1.bf16.msra.mxu0 %v2806_v49  ;;  %845 = vmatpush1.bf16.msra.mxu1 %v2807_v50  ;;  %v2878_v49 = vld [vmem:[#allocation8 + $0xec] ss:$16 sps:$4 sm:$0xff] (!%p2418_p13)   ;;  %v2880_v50 = vld [vmem:[#allocation8 + $0xe0] ss:$16 sps:$4 sm:$0xff] (!%p2418_p13)  }
  0xcd   : > { %805 = vmatprep.subr.bf16.mxu0 %v2808_v51  ;;  %846 = vmatprep.subr.bf16.mxu1 %v2810_v52  ;;  %v2881_v51 = vld [vmem:[#allocation8 + $0xe8] ss:$16 sps:$4 sm:$0xff] (!%p2418_p13)   ;;  %v2882_v52 = vld [vmem:[#allocation8 + $0x104] ss:$16 sps:$4 sm:$0xff] (!%p2418_p13)  }
  0xd0   : > { %806 = vmatpush1.bf16.msra.mxu0 %v2812_v53  ;;  %847 = vmatpush1.bf16.msra.mxu1 %v2813_v54  ;;  %v2884_v53 = vld [vmem:[#allocation8 + $0x10c] ss:$16 sps:$4 sm:$0xff] (!%p2418_p13)   ;;  %v2886_v54 = vld [vmem:[#allocation8 + $0x100] ss:$16 sps:$4 sm:$0xff] (!%p2418_p13)  }
  0xd1   : > { %807 = vmatprep.subr.bf16.mxu0 %v2814_v55  ;;  %848 = vmatprep.subr.bf16.mxu1 %v2816_v56  ;;  %v2887_v55 = vld [vmem:[#allocation8 + $0x108] ss:$16 sps:$4 sm:$0xff] (!%p2418_p13)   ;;  %v2888_v56 = vld [vmem:[#allocation8 + $0x124] ss:$16 sps:$4 sm:$0xff] (!%p2418_p13)  }
  0xd4   : > { %808 = vmatpush1.bf16.msra.mxu0 %v2818_v57  ;;  %849 = vmatpush1.bf16.msra.mxu1 %v2819_v58  ;;  %v881_v57 = vlaneseq (!%p2418_p13)  ;;  %v2890_v58 = vld [vmem:[#allocation8 + $0x12c] ss:$16 sps:$4 sm:$0xff] (!%p2418_p13)  }
  0xd5   : > { %809 = vmatprep.subr.bf16.mxu0 %v2820_v59  ;;  %850 = vmatprep.subr.bf16.mxu1 %v2822_v60  ;;  %v2892_v59 = vld [vmem:[#allocation8 + $0x120] ss:$16 sps:$4 sm:$0xff] (!%p2418_p13)   ;;  %v2893_v60 = vld [vmem:[#allocation8 + $0x128] ss:$16 sps:$4 sm:$0xff] (!%p2418_p13)  }
  0xd8   : > { %810 = vmatpush1.bf16.msra.mxu0 %v2824_v61  ;;  %851 = vmatpush1.bf16.msra.mxu1 %v2825_v62  ;;  %v2894_v61 = vld [vmem:[#allocation8 + $0x144] ss:$16 sps:$4 sm:$0xff] (!%p2418_p13)   ;;  %v3614_v62 = vshrl.u32 (!%p2418_p13), %v881_v57, 7  ;;  %v2965_v57 = vld [vmem:[#allocation8 + $0x2ac] ss:$16 sps:$4 sm:$0xff] (!%p2418_p13)  }
  0xd9   : > { %811 = vmatprep.subr.bf16.mxu0 %v2826_v63  ;;  %852 = vmatprep.subr.bf16.mxu1 %v2828_v0  ;;  %v2896_v63 = vld [vmem:[#allocation8 + $0x14c] ss:$16 sps:$4 sm:$0xff] (!%p2418_p13)   ;;  %v2898_v0 = vld [vmem:[#allocation8 + $0x140] ss:$16 sps:$4 sm:$0xff] (!%p2418_p13)  }
  0xdc   : > { %812 = vmatpush1.bf16.msra.mxu0 %v2830_v1  ;;  %853 = vmatpush1.bf16.msra.mxu1 %v2831_v2  ;;  %v2899_v1 = vld [vmem:[#allocation8 + $0x148] ss:$16 sps:$4 sm:$0xff] (!%p2418_p13)   ;;  %v2900_v2 = vld [vmem:[#allocation8 + $0x164] ss:$16 sps:$4 sm:$0xff] (!%p2418_p13)  }
  0xdd   : > { %1703 = vmatprep.subr.bf16.mxu0 (!%p2418_p13), %v2834_v20  ;;  %1785 = vmatprep.subr.bf16.mxu1 (!%p2418_p13), %v2836_v21  ;;  %v2916_v20 = vld [vmem:[#allocation8 + $0x1a0] ss:$16 sps:$4 sm:$0xff] (!%p2418_p13)   ;;  %v2917_v21 = vld [vmem:[#allocation8 + $0x1a8] ss:$16 sps:$4 sm:$0xff] (!%p2418_p13)  }
  0xdf   : > { %814 = vmatmul.mubr.bf16.vlgmr.msra.gmra.mrb[0].mxu0 %v2352_v3  ;;  %855 = vmatmul.mubr.bf16.vlgmr.msra.gmra.mrb[0].mxu1 %v2352_v3  ;;  %v887_v3 = vsub.s32 (!%p2418_p13), 1, %v3614_v62 }
  0xe0   : > { %1704 = vmatpush1.bf16.msra.mxu0 (!%p2418_p13), %v2838_v22  ;;  %1786 = vmatpush1.bf16.msra.mxu1 (!%p2418_p13), %v2839_v23  ;;  %v2918_v23 = vld [vmem:[#allocation8 + $0x1c4] ss:$16 sps:$4 sm:$0xff] (!%p2418_p13)  }
  0xe1   : > { %1705 = vmatprep.subr.bf16.mxu0 (!%p2418_p13), %v2840_v24  ;;  %1787 = vmatprep.subr.bf16.mxu1 (!%p2418_p13), %v2842_v25  ;;  %v2920_v25 = vld [vmem:[#allocation8 + $0x1cc] ss:$16 sps:$4 sm:$0xff] (!%p2418_p13)  }
  0xe4   : > { %1706 = vmatpush1.bf16.msra.mxu0 (!%p2418_p13), %v2844_v26  ;;  %1788 = vmatpush1.bf16.msra.mxu1 (!%p2418_p13), %v2845_v27  ;;  %v2922_v26 = vld [vmem:[#allocation8 + $0x1c0] ss:$16 sps:$4 sm:$0xff] (!%p2418_p13)  }
  0xe5   : > { %1707 = vmatprep.subr.bf16.mxu0 (!%p2418_p13), %v2846_v28  ;;  %1789 = vmatprep.subr.bf16.mxu1 (!%p2418_p13), %v2848_v29  ;;  %v2923_v28 = vld [vmem:[#allocation8 + $0x1c8] ss:$16 sps:$4 sm:$0xff] (!%p2418_p13)   ;;  %v2924_v29 = vld [vmem:[#allocation8 + $0x1e4] ss:$16 sps:$4 sm:$0xff] (!%p2418_p13)  }
  0xe8   : > { %1708 = vmatpush1.bf16.msra.mxu0 (!%p2418_p13), %v2850_v30  ;;  %1790 = vmatpush1.bf16.msra.mxu1 (!%p2418_p13), %v2851_v31  ;;  %v2926_v30 = vld [vmem:[#allocation8 + $0x1ec] ss:$16 sps:$4 sm:$0xff] (!%p2418_p13)   ;;  %v2928_v31 = vld [vmem:[#allocation8 + $0x1e0] ss:$16 sps:$4 sm:$0xff] (!%p2418_p13)  }
  0xe9   : > { %1709 = vmatprep.subr.bf16.mxu0 (!%p2418_p13), %v2852_v32  ;;  %1791 = vmatprep.subr.bf16.mxu1 (!%p2418_p13), %v2854_v33  ;;  %v2929_v33 = vld [vmem:[#allocation8 + $0x1e8] ss:$16 sps:$4 sm:$0xff] (!%p2418_p13)  }
  0xec   : > { %1710 = vmatpush1.bf16.msra.mxu0 (!%p2418_p13), %v2856_v34  ;;  %1792 = vmatpush1.bf16.msra.mxu1 (!%p2418_p13), %v2857_v35  ;;  %v2932_v34 = vld [vmem:[#allocation8 + $0x204] ss:$16 sps:$4 sm:$0xff] (!%p2418_p13)   ;;  %v2935_v35 = vld [vmem:[#allocation8 + $0x20c] ss:$16 sps:$4 sm:$0xff] (!%p2418_p13)  }
  0xed   : > { %1711 = vmatprep.subr.bf16.mxu0 (!%p2418_p13), %v2858_v36  ;;  %1793 = vmatprep.subr.bf16.mxu1 (!%p2418_p13), %v2860_v37  ;;  %v2930_v36 = vld [vmem:[#allocation8 + $0x200] ss:$16 sps:$4 sm:$0xff] (!%p2418_p13)  }
  0xf0   : > { %1712 = vmatpush1.bf16.msra.mxu0 (!%p2418_p13), %v2862_v38  ;;  %1794 = vmatpush1.bf16.msra.mxu1 (!%p2418_p13), %v2863_v39  ;;  %v2933_v38 = vld [vmem:[#allocation8 + $0x208] ss:$16 sps:$4 sm:$0xff] (!%p2418_p13)   ;;  %v2938_v39 = vld [vmem:[#allocation8 + $0x224] ss:$16 sps:$4 sm:$0xff] (!%p2418_p13)  }
  0xf1   : > { %1713 = vmatprep.subr.bf16.mxu0 (!%p2418_p13), %v2864_v40  ;;  %1795 = vmatprep.subr.bf16.mxu1 (!%p2418_p13), %v2866_v41  ;;  %v2941_v40 = vld [vmem:[#allocation8 + $0x22c] ss:$16 sps:$4 sm:$0xff] (!%p2418_p13)   ;;  %v2936_v41 = vld [vmem:[#allocation8 + $0x220] ss:$16 sps:$4 sm:$0xff] (!%p2418_p13)  }
  0xf4   : > { %1714 = vmatpush1.bf16.msra.mxu0 (!%p2418_p13), %v2868_v42  ;;  %1796 = vmatpush1.bf16.msra.mxu1 (!%p2418_p13), %v2869_v43  ;;  %v2939_v42 = vld [vmem:[#allocation8 + $0x228] ss:$16 sps:$4 sm:$0xff] (!%p2418_p13)   ;;  %v2944_v43 = vld [vmem:[#allocation8 + $0x244] ss:$16 sps:$4 sm:$0xff] (!%p2418_p13)  }
  0xf5   : > { %1715 = vmatprep.subr.bf16.mxu0 (!%p2418_p13), %v2870_v44  ;;  %1797 = vmatprep.subr.bf16.mxu1 (!%p2418_p13), %v2872_v45  ;;  %v2947_v44 = vld [vmem:[#allocation8 + $0x24c] ss:$16 sps:$4 sm:$0xff] (!%p2418_p13)   ;;  %v2942_v45 = vld [vmem:[#allocation8 + $0x240] ss:$16 sps:$4 sm:$0xff] (!%p2418_p13)  }
  0xf8   : > { %1716 = vmatpush1.bf16.msra.mxu0 (!%p2418_p13), %v2874_v46  ;;  %1798 = vmatpush1.bf16.msra.mxu1 (!%p2418_p13), %v2875_v47  ;;  %v2945_v46 = vld [vmem:[#allocation8 + $0x248] ss:$16 sps:$4 sm:$0xff] (!%p2418_p13)   ;;  %v2950_v47 = vld [vmem:[#allocation8 + $0x264] ss:$16 sps:$4 sm:$0xff] (!%p2418_p13)  }
  0xf9   : > { %1717 = vmatprep.subr.bf16.mxu0 (!%p2418_p13), %v2876_v48  ;;  %1799 = vmatprep.subr.bf16.mxu1 (!%p2418_p13), %v2878_v49  ;;  %v2953_v48 = vld [vmem:[#allocation8 + $0x26c] ss:$16 sps:$4 sm:$0xff] (!%p2418_p13)   ;;  %v2948_v49 = vld [vmem:[#allocation8 + $0x260] ss:$16 sps:$4 sm:$0xff] (!%p2418_p13)  }
  0xfc   : > { %1718 = vmatpush1.bf16.msra.mxu0 (!%p2418_p13), %v2880_v50  ;;  %1800 = vmatpush1.bf16.msra.mxu1 (!%p2418_p13), %v2881_v51  ;;  %v2951_v50 = vld [vmem:[#allocation8 + $0x268] ss:$16 sps:$4 sm:$0xff] (!%p2418_p13)   ;;  %v2956_v51 = vld [vmem:[#allocation8 + $0x284] ss:$16 sps:$4 sm:$0xff] (!%p2418_p13)  }
  0xfd   : > { %1719 = vmatprep.subr.bf16.mxu0 (!%p2418_p13), %v2882_v52  ;;  %1801 = vmatprep.subr.bf16.mxu1 (!%p2418_p13), %v2884_v53  ;;  %v2959_v52 = vld [vmem:[#allocation8 + $0x28c] ss:$16 sps:$4 sm:$0xff] (!%p2418_p13)   ;;  %v2954_v53 = vld [vmem:[#allocation8 + $0x280] ss:$16 sps:$4 sm:$0xff] (!%p2418_p13)  }
 0x100   : > { %1720 = vmatpush1.bf16.msra.mxu0 (!%p2418_p13), %v2886_v54  ;;  %1802 = vmatpush1.bf16.msra.mxu1 (!%p2418_p13), %v2887_v55  ;;  %v895_v54 = vsub.s32 (!%p2418_p13), 3, %v3614_v62  ;;  %v2957_v55 = vld [vmem:[#allocation8 + $0x288] ss:$16 sps:$4 sm:$0xff] (!%p2418_p13)  }
 0x101   : > { %1721 = vmatprep.subr.bf16.mxu0 (!%p2418_p13), %v2888_v56  ;;  %1803 = vmatprep.subr.bf16.mxu1 (!%p2418_p13), %v2890_v58  ;;  %v2962_v56 = vld [vmem:[#allocation8 + $0x2a4] ss:$16 sps:$4 sm:$0xff] (!%p2418_p13)   ;;  %v2960_v58 = vld [vmem:[#allocation8 + $0x2a0] ss:$16 sps:$4 sm:$0xff] (!%p2418_p13)  }
 0x104   : > { %1722 = vmatpush1.bf16.msra.mxu0 (!%p2418_p13), %v2892_v59  ;;  %1804 = vmatpush1.bf16.msra.mxu1 (!%p2418_p13), %v2893_v60  ;;  %v2963_v60 = vld [vmem:[#allocation8 + $0x2a8] ss:$16 sps:$4 sm:$0xff] (!%p2418_p13)  }
 0x105   : > { %1723 = vmatprep.subr.bf16.mxu0 (!%p2418_p13), %v2894_v61  ;;  %1805 = vmatprep.subr.bf16.mxu1 (!%p2418_p13), %v2896_v63  ;;  %v2968_v61 = vld [vmem:[#allocation8 + $0x2c4] ss:$16 sps:$4 sm:$0xff] (!%p2418_p13)   ;;  %v2971_v63 = vld [vmem:[#allocation8 + $0x2cc] ss:$16 sps:$4 sm:$0xff] (!%p2418_p13)  }
 0x108   : > { %1724 = vmatpush1.bf16.msra.mxu0 (!%p2418_p13), %v2898_v0  ;;  %1806 = vmatpush1.bf16.msra.mxu1 (!%p2418_p13), %v2899_v1  ;;  %v2966_v0 = vld [vmem:[#allocation8 + $0x2c0] ss:$16 sps:$4 sm:$0xff] (!%p2418_p13)   ;;  %v2969_v1 = vld [vmem:[#allocation8 + $0x2c8] ss:$16 sps:$4 sm:$0xff] (!%p2418_p13)  }
 0x109   : > { %1725 = vmatprep.subr.bf16.mxu0 (!%p2418_p13), %v2900_v2 }
 0x1b0   : > { %874 = sbr.rel (%p2418_p13) target bundleno = 961 (0x3c1), region = 72 }
 0x1b2   : > { %v815_v8 = vpop.f32.mrb[0].mxu0  ;;  %v856_v9 = vpop.f32.mrb[0].mxu1 }
 0x1b3   : > { %v863_v10 = vadd.f32 %v815_v8, %v385_v4  ;;  %v865_v11 = vadd.f32 %v856_v9, %v387_v5  ;;  %v817_v12 = vpop.f32.mrb[1].mxu0  ;;  %v858_v13 = vpop.f32.mrb[1].mxu1  ;;  %v2902_v4 = vld [vmem:[#allocation8 + $0x16c] ss:$16 sps:$4 sm:$0xff] (!%p2418_p13)   ;;  %v2905_v8 = vld [vmem:[#allocation8 + $0x168] ss:$16 sps:$4 sm:$0xff] (!%p2418_p13)  }
 0x1b4   : > { %v864_v14 = vadd.f32 %v817_v12, %v386_v6  ;;  %v866_v15 = vadd.f32 %v858_v13, %v388_v7  ;;  %v819_v16 = vpop.f32.mrb[2].mxu0  ;;  %v860_v17 = vpop.f32.mrb[2].mxu1  ;;  %v3620_v6 = vld [vmem:[%s3694_s2] sm:$0xf] (!%p2418_p13)  ;;  %1807 = vmatprep.subr.bf16.mxu1 (!%p2418_p13), %v2902_v4  ;;  %v2974_v4 = vld [vmem:[#allocation8 + $0x2e4] ss:$16 sps:$4 sm:$0xff] (!%p2418_p13)  }
 0x1b5   : > { %867 = vst [vmem:[#allocation2] sm:$0xff] %v863_v10  ;;  %869 = vst [vmem:[#allocation2 + $0x10] sm:$0xff] %v865_v11  ;;  %v820_v18 = vpop.f32.mrb[3].mxu0  ;;  %v861_v19 = vpop.f32.mrb[3].mxu1  ;;  %v2904_v7 = vld [vmem:[#allocation8 + $0x160] ss:$16 sps:$4 sm:$0xff] (!%p2418_p13)   ;;  %v888_v9 = vrot.slane (!%p2418_p13), %v3620_v6, %v887_v3  ;;  %1808 = vmatpush1.bf16.msra.mxu1 (!%p2418_p13), %v2905_v8  ;;  %v896_v59 = vrot.slane (!%p2418_p13), %v3620_v6, %v895_v54 }
 0x1b6   : > { %868 = vst [vmem:[#allocation2 + $0x8] sm:$0xff] %v864_v14  ;;  %870 = vst [vmem:[#allocation2 + $0x18] sm:$0xff] %v866_v15  ;;  %v2906_v10 = vld [vmem:[#allocation8 + $0x184] ss:$16 sps:$4 sm:$0xff] (!%p2418_p13)   ;;  %v2908_v11 = vld [vmem:[#allocation8 + $0x18c] ss:$16 sps:$4 sm:$0xff] (!%p2418_p13)   ;;  %1726 = vmatpush1.bf16.msra.mxu0 (!%p2418_p13), %v2904_v7 }
 0x1b7   : > { %v2910_v13 = vld [vmem:[#allocation8 + $0x180] ss:$16 sps:$4 sm:$0xff]   ;;  %v883_v14 = vsub.s32 0, %v3614_v62  ;;  %v2911_v15 = vld [vmem:[#allocation8 + $0x188] ss:$16 sps:$4 sm:$0xff]   ;;  %1727 = vmatprep.subr.bf16.mxu0 %v2906_v10  ;;  %1809 = vmatprep.subr.bf16.mxu1 %v2908_v11 }
 0x1b8   : > { %v2912_v16 = vld [vmem:[#allocation8 + $0x1a4] ss:$16 sps:$4 sm:$0xff]   ;;  %v2914_v18 = vld [vmem:[#allocation8 + $0x1ac] ss:$16 sps:$4 sm:$0xff]   ;;  %v2972_v10 = vld [vmem:[#allocation8 + $0x2e0] ss:$16 sps:$4 sm:$0xff]  }
 0x1b9   : > { %v884_v22 = vrot.slane %v3620_v6, %v883_v14  ;;  %1810 = vmatpush1.bf16.msra.mxu1 %v2911_v15  ;;  %v2977_v7 = vld [vmem:[#allocation8 + $0x2ec] ss:$16 sps:$4 sm:$0xff]   ;;  %v2975_v11 = vld [vmem:[#allocation8 + $0x2e8] ss:$16 sps:$4 sm:$0xff]  }
 0x1ba   : > { %1728 = vmatpush1.bf16.msra.mxu0 %v2910_v13  ;;  %1811 = vmatprep.subr.bf16.mxu1 %v2914_v18  ;;  %v2980_v13 = vld [vmem:[#allocation8 + $0x304] ss:$16 sps:$4 sm:$0xff]   ;;  %v2983_v15 = vld [vmem:[#allocation8 + $0x30c] ss:$16 sps:$4 sm:$0xff]  }
 0x1bb   : > { %1729 = vmatprep.subr.bf16.mxu0 %v2912_v16  ;;  %v2978_v16 = vld [vmem:[#allocation8 + $0x300] ss:$16 sps:$4 sm:$0xff]   ;;  %v2986_v18 = vld [vmem:[#allocation8 + $0x324] ss:$16 sps:$4 sm:$0xff]  }
 0x1bc   : > { %v875_v24 = vld [vmem:[#allocation2] sm:$0xff] }
 0x1bd   : > { %v876_v5 = vld [vmem:[#allocation2 + $0x8] sm:$0xff]  ;;  %v901_v27 = vadd.f32 %v884_v22, %v875_v24  ;;  %1812 = vmatpush1.bf16.msra.mxu1 %v2917_v21  ;;  %v878_v2 = vld [vmem:[#allocation2 + $0x18] sm:$0xff]  ;;  %v2992_v22 = vld [vmem:[#allocation8 + $0x344] ss:$16 sps:$4 sm:$0xff]  }
 0x1be   : > { %v902_v12 = vadd.f32 %v888_v9, %v876_v5  ;;  %1730 = vmatpush1.bf16.msra.mxu0 %v2916_v20  ;;  %1813 = vmatprep.subr.bf16.mxu1 %v2920_v25  ;;  %v904_v5 = vadd.f32 %v896_v59, %v878_v2  ;;  %v891_v9 = vsub.s32 2, %v3614_v62  ;;  %v2984_v20 = vld [vmem:[#allocation8 + $0x320] ss:$16 sps:$4 sm:$0xff]   ;;  %v2987_v21 = vld [vmem:[#allocation8 + $0x328] ss:$16 sps:$4 sm:$0xff]  }
 0x1bf   : > { %1731 = vmatprep.subr.bf16.mxu0 %v2918_v23  ;;  %v905_v32 = vmax.f32 %v901_v27, 0.0  ;;  %v2995_v23 = vld [vmem:[#allocation8 + $0x34c] ss:$16 sps:$4 sm:$0xff]   ;;  %v2990_v24 = vld [vmem:[#allocation8 + $0x340] ss:$16 sps:$4 sm:$0xff]  }
 0x1c0   : > { %v906_v17 = vmax.f32 %v902_v12, 0.0  ;;  %v908_v8 = vmax.f32 %v904_v5, 0.0  ;;  %v2993_v25 = vld [vmem:[#allocation8 + $0x348] ss:$16 sps:$4 sm:$0xff]   ;;  %v3001_v27 = vld [vmem:[#allocation8 + $0x36c] ss:$16 sps:$4 sm:$0xff]  }
 0x1c1   : > { %1814 = vmatpush1.bf16.msra.mxu1 %v2923_v28  ;;  %v909_v37 = vpack.c.bf16 %v905_v32, %v905_v32  ;;  %v2996_v28 = vld [vmem:[#allocation8 + $0x360] ss:$16 sps:$4 sm:$0xff]   ;;  %v3040_v2 = vld [vmem:[#allocation9 + $0x18] sm:$0xff]  }
 0x1c2   : > { %v910_v19 = vpack.c.bf16 %v906_v17, %v906_v17  ;;  %1732 = vmatpush1.bf16.msra.mxu0 %v2922_v26  ;;  %1815 = vmatprep.subr.bf16.mxu1 %v2926_v30  ;;  %v912_v12 = vpack.c.bf16 %v908_v8, %v908_v8  ;;  %v2981_v17 = vld [vmem:[#allocation8 + $0x308] ss:$16 sps:$4 sm:$0xff]   ;;  %v2998_v26 = vld [vmem:[#allocation8 + $0x364] ss:$16 sps:$4 sm:$0xff]   ;;  %v3002_v32 = vld [vmem:[#allocation8 + $0x380] ss:$16 sps:$4 sm:$0xff]  }
 0x1c3   : > { %1733 = vmatprep.subr.bf16.mxu0 %v2924_v29  ;;  %v2999_v29 = vld [vmem:[#allocation8 + $0x368] ss:$16 sps:$4 sm:$0xff]   ;;  %v3004_v30 = vld [vmem:[#allocation8 + $0x384] ss:$16 sps:$4 sm:$0xff]  }
 0x1c4   : > { %1735 = vmatprep.mubr.bf16.mxu0 %v910_v19  ;;  %1817 = vmatprep.mubr.bf16.mxu1 %v910_v19  ;;  %v2989_v19 = vld [vmem:[#allocation8 + $0x32c] ss:$16 sps:$4 sm:$0xff]   ;;  %v3034_v59 = vld [vmem:[#allocation9 + $0x50] sm:$0xff]   ;;  %v3042_v5 = vld [vmem:[#allocation9 + $0x60] sm:$0xff]  }
 0x1c5   : > { %1816 = vmatpush1.bf16.msra.mxu1 %v2929_v33  ;;  %v3005_v33 = vld [vmem:[#allocation8 + $0x388] ss:$16 sps:$4 sm:$0xff]   ;;  %v3044_v8 = vld [vmem:[#allocation9 + $0x20] sm:$0xff]  }
 0x1c6   : > { %1734 = vmatpush1.bf16.msra.mxu0 %v2928_v31  ;;  %1826 = vmatprep.subr.bf16.mxu1 %v2935_v35  ;;  %v3007_v31 = vld [vmem:[#allocation8 + $0x38c] ss:$16 sps:$4 sm:$0xff]  }
 0x1c7   : > { %1744 = vmatprep.subr.bf16.mxu0 %v2932_v34  ;;  %v3010_v34 = vld [vmem:[#allocation8 + $0x3a4] ss:$16 sps:$4 sm:$0xff]   ;;  %v3013_v35 = vld [vmem:[#allocation8 + $0x3ac] ss:$16 sps:$4 sm:$0xff]  }
 0x1c8   : > { %1818 = vmatmul.mubr.bf16.vlgmr.msra.gmra.mrb[0].mxu1 %v909_v37 }
 0x1c9   : > { %1736 = vmatmul.mubr.bf16.vlgmr.msra.gmra.mrb[0].mxu0 %v909_v37  ;;  %1827 = vmatpush1.bf16.msra.mxu1 %v2933_v38  ;;  %v3011_v37 = vld [vmem:[#allocation8 + $0x3a8] ss:$16 sps:$4 sm:$0xff]   ;;  %v877_v38 = vld [vmem:[#allocation2 + $0x10] sm:$0xff] }
 0x1ca   : > { %1745 = vmatpush1.bf16.msra.mxu0 %v2930_v36  ;;  %1828 = vmatprep.subr.bf16.mxu1 %v2941_v40  ;;  %v3008_v36 = vld [vmem:[#allocation8 + $0x3a0] ss:$16 sps:$4 sm:$0xff]   ;;  %v3016_v40 = vld [vmem:[#allocation8 + $0x3c4] ss:$16 sps:$4 sm:$0xff]  }
 0x1cb   : > { %1746 = vmatprep.subr.bf16.mxu0 %v2938_v39  ;;  %1776 = vmatprep.mubr.bf16.mxu0 %v912_v12  ;;  %v892_v39 = vrot.slane %v3620_v6, %v891_v9  ;;  %v3023_v6 = vld [vmem:[#allocation8 + $0x3e8] ss:$16 sps:$4 sm:$0xff]  }
 0x1cc   : > { %1858 = vmatprep.mubr.bf16.mxu1 %v912_v12  ;;  %v3047_v12 = vld [vmem:[#allocation9 + $0xe8] sm:$0xff]  }
 0x1cd   : > { %1829 = vmatpush1.bf16.msra.mxu1 %v2939_v42  ;;  %v903_v42 = vadd.f32 %v892_v39, %v877_v38 }
 0x1ce   : > { %1747 = vmatpush1.bf16.msra.mxu0 %v2936_v41  ;;  %1830 = vmatprep.subr.bf16.mxu1 %v2947_v44  ;;  %v3019_v41 = vld [vmem:[#allocation8 + $0x3cc] ss:$16 sps:$4 sm:$0xff]   ;;  %v3017_v44 = vld [vmem:[#allocation8 + $0x3c8] ss:$16 sps:$4 sm:$0xff]  }
 0x1cf   : > { %1748 = vmatprep.subr.bf16.mxu0 %v2944_v43  ;;  %v3014_v43 = vld [vmem:[#allocation8 + $0x3c0] ss:$16 sps:$4 sm:$0xff]  }
 0x1d1   : > { %1831 = vmatpush1.bf16.msra.mxu1 %v2945_v46  ;;  %v3025_v46 = vld [vmem:[#allocation8 + $0x3ec] ss:$16 sps:$4 sm:$0xff]  }
 0x1d2   : > { %1749 = vmatpush1.bf16.msra.mxu0 %v2942_v45  ;;  %1832 = vmatprep.subr.bf16.mxu1 %v2953_v48  ;;  %v3022_v45 = vld [vmem:[#allocation8 + $0x3e4] ss:$16 sps:$4 sm:$0xff]   ;;  %v3020_v48 = vld [vmem:[#allocation8 + $0x3e0] ss:$16 sps:$4 sm:$0xff]  }
 0x1d3   : > { %1750 = vmatprep.subr.bf16.mxu0 %v2950_v47  ;;  %v907_v47 = vmax.f32 %v903_v42, 0.0 }
 0x1d5   : > { %1833 = vmatpush1.bf16.msra.mxu1 %v2951_v50  ;;  %v3027_v50 = vld [vmem:[#allocation9 + $0xc0] sm:$0xff]  }
 0x1d6   : > { %1751 = vmatpush1.bf16.msra.mxu0 %v2948_v49  ;;  %1834 = vmatprep.subr.bf16.mxu1 %v2959_v52  ;;  %v3026_v49 = vld [vmem:[#allocation9 + $0x40] sm:$0xff]  }
 0x1d7   : > { %1752 = vmatprep.subr.bf16.mxu0 %v2956_v51  ;;  %v911_v51 = vpack.c.bf16 %v907_v47, %v907_v47  ;;  %v3028_v52 = vld [vmem:[#allocation9] sm:$0xff]  }
 0x1d9   : > { %1835 = vmatpush1.bf16.msra.mxu1 %v2957_v55  ;;  %v3030_v55 = vld [vmem:[#allocation9 + $0x48] sm:$0xff]  }
 0x1da   : > { %1753 = vmatpush1.bf16.msra.mxu0 %v2954_v53  ;;  %1836 = vmatprep.subr.bf16.mxu1 %v2965_v57  ;;  %v3029_v53 = vld [vmem:[#allocation9 + $0x80] sm:$0xff]   ;;  %v3032_v57 = vld [vmem:[#allocation9 + $0x8] sm:$0xff]  }
 0x1db   : > { %1754 = vmatprep.subr.bf16.mxu0 %v2962_v56  ;;  %v3031_v56 = vld [vmem:[#allocation9 + $0xc8] sm:$0xff]  }
 0x1dd   : > { %1837 = vmatpush1.bf16.msra.mxu1 %v2963_v60  ;;  %v3035_v60 = vld [vmem:[#allocation9 + $0xd0] sm:$0xff]  }
 0x1de   : > { %1755 = vmatpush1.bf16.msra.mxu0 %v2960_v58  ;;  %1838 = vmatprep.subr.bf16.mxu1 %v2971_v63  ;;  %v3033_v58 = vld [vmem:[#allocation9 + $0x88] sm:$0xff]   ;;  %v3037_v63 = vld [vmem:[#allocation9 + $0x90] sm:$0xff]  }
 0x1df   : > { %1756 = vmatprep.subr.bf16.mxu0 %v2968_v61  ;;  %v3036_v61 = vld [vmem:[#allocation9 + $0x10] sm:$0xff]  }
 0x1e1   : > { %1839 = vmatpush1.bf16.msra.mxu1 %v2969_v1  ;;  %v3039_v1 = vld [vmem:[#allocation9 + $0xd8] sm:$0xff]  }
 0x1e2   : > { %1757 = vmatpush1.bf16.msra.mxu0 %v2966_v0  ;;  %1840 = vmatprep.subr.bf16.mxu1 %v2977_v7  ;;  %v3038_v0 = vld [vmem:[#allocation9 + $0x58] sm:$0xff]   ;;  %v3043_v7 = vld [vmem:[#allocation9 + $0xe0] sm:$0xff]  }
 0x1e3   : > { %1758 = vmatprep.subr.bf16.mxu0 %v2974_v4  ;;  %v3041_v4 = vld [vmem:[#allocation9 + $0x98] sm:$0xff]  }
 0x1e5   : > { %1841 = vmatpush1.bf16.msra.mxu1 %v2975_v11  ;;  %v3046_v11 = vld [vmem:[#allocation9 + $0x68] sm:$0xff]  }
 0x1e6   : > { %1759 = vmatpush1.bf16.msra.mxu0 %v2972_v10  ;;  %1842 = vmatprep.subr.bf16.mxu1 %v2983_v15  ;;  %v3045_v10 = vld [vmem:[#allocation9 + $0xa0] sm:$0xff]   ;;  %v3049_v15 = vld [vmem:[#allocation9 + $0xa8] sm:$0xff]  }
 0x1e7   : > { %1760 = vmatprep.subr.bf16.mxu0 %v2980_v13  ;;  %v3048_v13 = vld [vmem:[#allocation9 + $0x28] sm:$0xff]  }
 0x1e9   : > { %1843 = vmatpush1.bf16.msra.mxu1 %v2981_v17  ;;  %v3051_v17 = vld [vmem:[#allocation9 + $0xf0] sm:$0xff]  }
 0x1ea   : > { %1761 = vmatpush1.bf16.msra.mxu0 %v2978_v16  ;;  %1844 = vmatprep.subr.bf16.mxu1 %v2989_v19  ;;  %v3050_v16 = vld [vmem:[#allocation9 + $0x70] sm:$0xff]  }
 0x1eb   : > { %1762 = vmatprep.subr.bf16.mxu0 %v2986_v18  ;;  %v3052_v18 = vld [vmem:[#allocation9 + $0x30] sm:$0xff]  }
 0x1ec   : > { %v3053_v19 = vld [vmem:[#allocation9 + $0xb0] sm:$0xff]  }
 0x1ed   : > { %1845 = vmatpush1.bf16.msra.mxu1 %v2987_v21  ;;  %v3055_v21 = vld [vmem:[#allocation9 + $0xf8] sm:$0xff]  }
 0x1ee   : > { %1763 = vmatpush1.bf16.msra.mxu0 %v2984_v20  ;;  %1846 = vmatprep.subr.bf16.mxu1 %v2995_v23  ;;  %v3054_v20 = vld [vmem:[#allocation9 + $0x78] sm:$0xff]  }
 0x1ef   : > { %1764 = vmatprep.subr.bf16.mxu0 %v2992_v22  ;;  %v3056_v22 = vld [vmem:[#allocation9 + $0x38] sm:$0xff]  }
 0x1f0   : > { %v3057_v23 = vld [vmem:[#allocation9 + $0xb8] sm:$0xff]  }
 0x1f1   : > { %1847 = vmatpush1.bf16.msra.mxu1 %v2993_v25 }
 0x1f2   : > { %1765 = vmatpush1.bf16.msra.mxu0 %v2990_v24  ;;  %1848 = vmatprep.subr.bf16.mxu1 %v3001_v27  ;;  %v1041_v24 = vld [vmem:[%s3696_s4] sm:$0xf] }
 0x1f3   : > { %1766 = vmatprep.subr.bf16.mxu0 %v2998_v26  ;;  %v1046_v25 = vrot.slane %v1041_v24, %v883_v14  ;;  %v1054_v26 = vrot.slane %v1041_v24, %v891_v9  ;;  %v1050_v27 = vrot.slane %v1041_v24, %v887_v3 }
 0x1f5   : > { %1849 = vmatpush1.bf16.msra.mxu1 %v2999_v29 }
 0x1f6   : > { %1767 = vmatpush1.bf16.msra.mxu0 %v2996_v28  ;;  %1850 = vmatprep.subr.bf16.mxu1 %v3007_v31  ;;  %v1058_v28 = vrot.slane %v1041_v24, %v895_v54 }
 0x1f7   : > { %1768 = vmatprep.subr.bf16.mxu0 %v3004_v30 }
 0x1f9   : > { %1851 = vmatpush1.bf16.msra.mxu1 %v3005_v33 }
 0x1fa   : > { %1769 = vmatpush1.bf16.msra.mxu0 %v3002_v32  ;;  %1852 = vmatprep.subr.bf16.mxu1 %v3013_v35 }
 0x1fb   : > { %1770 = vmatprep.subr.bf16.mxu0 %v3010_v34 }
 0x1fd   : > { %1853 = vmatpush1.bf16.msra.mxu1 %v3011_v37 }
 0x1fe   : > { %1771 = vmatpush1.bf16.msra.mxu0 %v3008_v36  ;;  %1854 = vmatprep.subr.bf16.mxu1 %v3019_v41 }
 0x1ff   : > { %1772 = vmatprep.subr.bf16.mxu0 %v3016_v40 }
 0x201   : > { %1855 = vmatpush1.bf16.msra.mxu1 %v3017_v44 }
 0x202   : > { %1773 = vmatpush1.bf16.msra.mxu0 %v3014_v43  ;;  %1856 = vmatprep.subr.bf16.mxu1 %v3025_v46  ;;  %v2547_v46 = vld [vmem:[%s3698_s6] ss:$0 sm:$0xff] }
 0x203   : > { %1774 = vmatprep.subr.bf16.mxu0 %v3022_v45 }
 0x205   : > { %1857 = vmatpush1.bf16.msra.mxu1 %v3023_v6 }
 0x206   : > { %1775 = vmatpush1.bf16.msra.mxu0 %v3020_v48  ;;  %2609 = vmatprep.subr.bf16.mxu1 %v3027_v50 }
 0x207   : > { %2587 = vmatprep.subr.bf16.mxu0 %v3026_v49 }
 0x208   : > { %1859 = vmatmul.mubr.bf16.vlgmr.msra.gmra.mrb[0].mxu1 %v911_v51 }
 0x209   : > { %1777 = vmatmul.mubr.bf16.vlgmr.msra.gmra.mrb[0].mxu0 %v911_v51  ;;  %2610 = vmatpush3.bf16.msra.mxu1 %v3029_v53 }
 0x20a   : > { %2588 = vmatpush3.bf16.msra.mxu0 %v3028_v52  ;;  %2611 = vmatprep.subr.bf16.mxu1 %v3031_v56 }
 0x20b   : > { %2589 = vmatprep.subr.bf16.mxu0 %v3030_v55 }
 0x20d   : > { %2612 = vmatpush3.bf16.msra.mxu1 %v3033_v58 }
 0x20e   : > { %2590 = vmatpush3.bf16.msra.mxu0 %v3032_v57  ;;  %2613 = vmatprep.subr.bf16.mxu1 %v3035_v60 }
 0x20f   : > { %2591 = vmatprep.subr.bf16.mxu0 %v3034_v59 }
 0x211   : > { %2614 = vmatpush3.bf16.msra.mxu1 %v3037_v63 }
 0x212   : > { %2592 = vmatpush3.bf16.msra.mxu0 %v3036_v61  ;;  %2615 = vmatprep.subr.bf16.mxu1 %v3039_v1 }
 0x213   : > { %2593 = vmatprep.subr.bf16.mxu0 %v3038_v0 }
 0x215   : > { %2616 = vmatpush3.bf16.msra.mxu1 %v3041_v4 }
 0x216   : > { %2594 = vmatpush3.bf16.msra.mxu0 %v3040_v2  ;;  %2617 = vmatprep.subr.bf16.mxu1 %v3043_v7 }
 0x217   : > { %2595 = vmatprep.subr.bf16.mxu0 %v3042_v5 }
 0x219   : > { %2618 = vmatpush3.bf16.msra.mxu1 %v3045_v10 }
 0x21a   : > { %2596 = vmatpush3.bf16.msra.mxu0 %v3044_v8  ;;  %2619 = vmatprep.subr.bf16.mxu1 %v3047_v12 }
 0x21b   : > { %2597 = vmatprep.subr.bf16.mxu0 %v3046_v11 }
 0x21d   : > { %2620 = vmatpush3.bf16.msra.mxu1 %v3049_v15 }
 0x21e   : > { %2598 = vmatpush3.bf16.msra.mxu0 %v3048_v13  ;;  %2621 = vmatprep.subr.bf16.mxu1 %v3051_v17 }
 0x21f   : > { %2599 = vmatprep.subr.bf16.mxu0 %v3050_v16 }
 0x221   : > { %2622 = vmatpush3.bf16.msra.mxu1 %v3053_v19 }
 0x222   : > { %2600 = vmatpush3.bf16.msra.mxu0 %v3052_v18  ;;  %2623 = vmatprep.subr.bf16.mxu1 %v3055_v21 }
 0x223   : > { %2601 = vmatprep.subr.bf16.mxu0 %v3054_v20 }
 0x225   : > { %2624 = vmatpush3.bf16.msra.mxu1 %v3057_v23 }
 0x226   : > { %2602 = vmatpush3.bf16.msra.mxu0 %v3056_v22 }
 0x2db   : > { %v1860_v30 = vpop.f32.mrb[0].mxu1 }
 0x2dc   : > { %v1778_v29 = vpop.f32.mrb[0].mxu0  ;;  %v2633_v32 = vadd.f32 %v1860_v30, %v1054_v26  ;;  %v1862_v34 = vpop.f32.mrb[1].mxu1 }
 0x2dd   : > { %v2631_v31 = vadd.f32 %v1778_v29, %v1046_v25  ;;  %v1780_v33 = vpop.f32.mrb[1].mxu0  ;;  %v2634_v36 = vadd.f32 %v1862_v34, %v1058_v28  ;;  %v1864_v38 = vpop.f32.mrb[2].mxu1 }
 0x2de   : > { %v2632_v35 = vadd.f32 %v1780_v33, %v1050_v27  ;;  %v1782_v37 = vpop.f32.mrb[2].mxu0  ;;  %v1869_v39 = vmax.f32 %v2633_v32, 0.0  ;;  %v1865_v9 = vpop.f32.mrb[3].mxu1 }
 0x2df   : > { %v1867_v14 = vmax.f32 %v2631_v31, 0.0  ;;  %v1783_v40 = vpop.f32.mrb[3].mxu0  ;;  %v1870_v42 = vmax.f32 %v2634_v36, 0.0 }
 0x2e0   : > { %v1868_v41 = vmax.f32 %v2632_v35, 0.0  ;;  %v1873_v54 = vpack.c.bf16 %v1869_v39, %v1869_v39 }
 0x2e1   : > { %v1874_v43 = vpack.c.bf16 %v1870_v42, %v1870_v42  ;;  %v1871_v62 = vpack.c.bf16 %v1867_v14, %v1867_v14 }
 0x2e2   : > { %v1872_v3 = vpack.c.bf16 %v1868_v41, %v1868_v41 }
 0x2e3   : > { %2210 = vmatprep.mubr.bf16.mxu1 %v1874_v43 }
 0x2e4   : > { %2170 = vmatprep.mubr.bf16.mxu0 %v1872_v3  ;;  %2211 = vmatmul.mubr.bf16.vlgmr.msra.gmra.mrb[4].mxu1 %v1873_v54 }
 0x2e5   : > { %2171 = vmatmul.mubr.bf16.vlgmr.msra.gmra.mrb[4].mxu0 %v1871_v62 }
 0x3b7   : > { %v2625_v45 = vpop.f32.mrb[4].mxu1 }
 0x3b8   : > { %v2603_v44 = vpop.f32.mrb[4].mxu0  ;;  %v2626_v48 = vpop.f32.mrb[5].mxu1 }
 0x3b9   : > { %v2604_v47 = vpop.f32.mrb[5].mxu0  ;;  %v2627_v49 = vadd.f32 %v2626_v48, %v2625_v45  ;;  %v2628_v51 = vpop.f32.mrb[6].mxu1 }
 0x3ba   : > { %v2605_v6 = vadd.f32 %v2604_v47, %v2603_v44  ;;  %v2606_v50 = vpop.f32.mrb[6].mxu0  ;;  %v2629_v53 = vpop.f32.mrb[7].mxu1 }
 0x3bb   : > { %v2607_v52 = vpop.f32.mrb[7].mxu0 }
 0x3bc   : > { %v2173_v55 = vadd.f32 %v2605_v6, %v2547_v46 }
 0x3be   : > { %v2213_v56 = vadd.f32 %v2627_v49, %v2173_v55 }
 0x3c0   : > { %2218 = vst [vmem:[#allocation11] sm:$0xff] %v2213_v56 }
 0x3c1 PF: > { %p2678_p2 = scmp.eq.s32.totalorder %s3347_s30, 2  ;;  %s3277_s14 = smov [#allocation11]  }
 0x3c2   : > { %s2228_s12 = sshll.u32 %s3277_s14, 4  ;;  %s2229_s12 = int_to_ptr.vmem [resolvable:$true] %s2228_s12 }
 0x3c3   : > { %s3174_s3 = scalar_lea.vmem %s2229_s12, 128  ;;  %p3181_p1 = scmp.lt.s32.totalorder %s2229_s12, %s2229_s12 }
 0x3c4   : > { %p3175_p3 = scmp.ne.s32.totalorder %s2229_s12, %s3174_s3  ;;  %p3182_p4 = scmp.lt.s32.totalorder %s3174_s3, %s3174_s3 }
 0x3c6   : > { %p3176_p0 = pnand %p3175_p3, %p2678_p2  ;;  %p3183_p12 = por %p3182_p4, %p3181_p1 }
 0x3c8   : > { %p3177_p6 = pneg %p3176_p0 }
 0x3ca   : > { %p3184_p9 = pnand %p3183_p12, %p3177_p6 }
 0x3cc   : > { %3187 = shalt.err (!%p3184_p9)
}
 0x3cd   : > { %s3188_s22 = scalar_lea.hbm %s3699_s7, 128 }
 0x3ce   : > { %p3189_p7 = scmp.ne.s32.totalorder %s3699_s7, %s3188_s22  ;;  %p3194_p10 = scmp.lt.u32.totalorder %s3188_s22, %s3699_s7 }
 0x3d0   : > { %p3190_p5 = pnand %p3189_p7, %p2678_p2 }
 0x3d2   : > { %p3191_p8 = pneg %p3190_p5 }
 0x3d4   : > { %p3196_p11 = pnand %p3194_p10, %p3191_p8 }
 0x3d6   : > { %3199 = shalt.err (!%p3196_p11)
}
 0x3d7   : > { %2656 = dma.vmem_to_hbm [thread:$0]  (%p2678_p2), %s2229_s12, 128, %s3699_s7, [#allocation5]  }
 0x3d8   : > { %3241 = dma.done.wait (%p2678_p2), [#allocation5], 128  }
 0x3d9   : > { %3243 = vsyncadd (%p2678_p2), [#allocation5], 4294967168 }
 0x3da PF: > { %s25_s29 = sadd.s32 1, %s3266_s29   ;;  %s3722_s24 = smov %s3250_s25 }
 0x3db   : > { %p22_p13 = scmp.ge.s32.totalorder %s25_s29, 5   ;;  %s3723_s25 = smov %s3254_s26 }
 0x3dc   : > { %s3724_s26 = smov %s3439_s20  ;;  %s3725_s27 = smov %s3262_s28 }
 0x3dd   : > { %s3726_s28 = smov %s3728_s16  ;;  %24 = sbr.rel (!%p22_p13) target bundleno = 11 (0xb), region = 115 }
 0x3e4   :  { %2241 = vsyncpa [#allocation4], 1 }
 0x3e5   :  { %2243 = vsyncpa [#allocation4 + $0x1], 1 }
 0x3e6   :  { %2244 = vsyncpa [#allocation7], 1 }
 0x3e7   :  { %2246 = vsyncpa [#allocation7 + $0x1], 1 }
 0x3e8   :  { %2247 = vsyncpa [#allocation10], 1 }
 0x3e9   :  { %2248 = vsyncpa [#allocation5], 1 }
 0x3ea   :  { %2250 = vsyncpa [#allocation5 + $0x1], 1 }

</bundles_post_ra>
